<compile_context>
chip_gen: v7x
topology: tpu7x:2x2x1
jax: 0.10.0
libtpu: 0.0.40
codegen_flags: <defaults>
</compile_context>

<pallas_src>
import functools
import math

import jax
import jax.numpy as jnp
from jax.experimental import pallas as pl
from jax.experimental.pallas import tpu as pltpu


def _round_up(n, m):
    return ((n + m - 1) // m) * m


def _pad_to(a, shape):
    return jnp.pad(a, [(0, s - d) for s, d in zip(shape, a.shape)])


def _gelu_tanh(x):
    # tanh-approx GELU (EUP transcendental path).
    c = math.sqrt(2.0 / math.pi)
    return 0.5 * x * (1.0 + jnp.tanh(c * (x + 0.044715 * x * x * x)))


def _gelu_erf(x):
    # Exact erf GELU (torch default) -- used by the pure-JAX reference.
    return 0.5 * x * (1.0 + jax.lax.erf(x * (1.0 / math.sqrt(2.0))))


def _dvae_decoder_kernel(
    x_ref,      # (Bt, T, idim_p)       bf16
    c1w_ref,    # (3, idim_p, bn_p)     bf16  (tap-major)
    c1b_ref,    # (1, bn_p)             f32
    c2w_ref,    # (3, bn_p, hid_p)      bf16
    c2b_ref,    # (1, hid_p)            f32
    pk_ref,     # (1, K+5, hid_p)       f32   packed per-layer vectors
    p1w_ref,    # (1, hid_p, int_p)     bf16
    p1b_ref,    # (1, 1, int_p)         f32
    p2w_ref,    # (1, int_p, hid_p)     bf16
    cow_ref,    # (hid_p, odim_p)       bf16
    o_ref,      # (Bt, T, odim_p)       f32
    y_scr,      # VMEM (Bt, left+T+pad, hid_p) f32: carried activation + halo
    *,
    n_layer: int,
    kernel: int,
    dilation: int,
    true_hidden: int,
    pad: int,
    left: int,
):
    l = pl.program_id(1)
    Bt, T, _ = x_ref.shape
    Hp = y_scr.shape[2]
    rows = Bt * T
    bf16, f32 = jnp.bfloat16, jnp.float32
    K = kernel

    def conv3(x3, w_ref, bias):
        # Conv1d(k=3, stride=1, pad=1), channel-last, batch folded into M.
        # Three tap matmuls on shifted views (no 3*cin-wide im2col buffer).
        bt, t, cin = x3.shape
        zrow = jnp.zeros((bt, 1, cin), x3.dtype)
        x_prev = jnp.concatenate([zrow, x3[:, :t - 1, :]], axis=1)   # row t-1
        x_next = jnp.concatenate([x3[:, 1:, :], zrow], axis=1)       # row t+1

        def mm(a3, w2):
            return jnp.dot(a3.reshape(bt * t, cin).astype(bf16), w2,
                           preferred_element_type=f32)

        return mm(x_prev, w_ref[0]) + mm(x3, w_ref[1]) + mm(x_next, w_ref[2]) + bias

    # ---- conv_in: only on the first layer step of each batch block ----------
    @pl.when(l == 0)
    def _conv_in():
        if pad > 0:   # zero the depthwise-conv halo rows once per batch block
            y_scr[:, pl.ds(left - pad, pad), :] = jnp.zeros((Bt, pad, Hp), f32)
            y_scr[:, pl.ds(left + T, pad), :] = jnp.zeros((Bt, pad, Hp), f32)
        x3 = x_ref[...].astype(f32)                                   # (Bt,T,idim_p)
        y1 = _gelu_tanh(conv3(x3, c1w_ref, c1b_ref[...]))             # (rows, bn_p)
        y1 = y1.reshape(Bt, T, y1.shape[1])
        y2 = conv3(y1, c2w_ref, c2b_ref[...])                         # (rows, hid_p)
        y_scr[:, pl.ds(left, T), :] = y2.reshape(Bt, T, Hp)

    # ---- ConvNeXt block l (weights streamed once per layer step) ------------
    pk = pk_ref[0]                                   # (K+5, Hp): taps, dwb, lnw, lnb, p2b, g

    # Depthwise dilated conv, bias-seeded accumulator (no zero-fill pass).
    acc = y_scr[:, pl.ds(left - pad, T), :] * pk[0:1, :] + pk[K:K + 1, :]
    for j in range(1, K):                            # static unroll
        off = left - pad + j * dilation              # static int offset
        acc = acc + y_scr[:, pl.ds(off, T), :] * pk[j:j + 1, :]
    yd = acc.reshape(rows, Hp)                       # (rows, Hp), pad lanes == 0
    residual = y_scr[:, pl.ds(left, T), :].reshape(rows, Hp)

    # LayerNorm over the TRUE channels: two-pass variance with pad lanes masked
    # (better conditioned than E[x^2] - mean^2).
    inv_h = 1.0 / float(true_hidden)
    lane = jax.lax.broadcasted_iota(jnp.int32, (1, Hp), 1)
    chan_mask = lane < true_hidden
    mean = jnp.sum(yd, axis=-1, keepdims=True) * inv_h
    d = jnp.where(chan_mask, yd - mean, 0.0)
    var = jnp.sum(d * d, axis=-1, keepdims=True) * inv_h
    yn = d * jax.lax.rsqrt(var + 1e-6) * pk[K + 1:K + 2, :] + pk[K + 2:K + 3, :]

    # Pointwise MLP: Linear -> GELU -> Linear (bf16 MXU, f32 acc, M = Bt*T).
    # TODO(synk): for very long T, chunk these matmuls over row slabs.
    h = jnp.dot(yn.astype(bf16), p1w_ref[0], preferred_element_type=f32) + p1b_ref[0]
    h = _gelu_tanh(h)
    h = jnp.dot(h.astype(bf16), p2w_ref[0], preferred_element_type=f32) + pk[K + 3:K + 4, :]
    y_new = h * pk[K + 4:K + 5, :] + residual        # layer scale + residual
    y_scr[:, pl.ds(left, T), :] = y_new.reshape(Bt, T, Hp)

    # ---- conv_out (1x1, no bias): only on the last layer step ---------------
    @pl.when(l == n_layer - 1)
    def _conv_out():
        out = jnp.dot(y_new.astype(bf16), cow_ref[...], preferred_element_type=f32)
        o_ref[...] = out.reshape(Bt, T, o_ref.shape[2]).astype(o_ref.dtype)


def dvae_decoder_pallas_nlc(x_btc, params, *, dilation):
    """Channel-last entry point. x_btc: (B, T, idim) f32 -> (B, T, odim) f32."""
    B, T, idim = x_btc.shape
    n_layer, K, hidden = params["dww"].shape
    bn_dim = params["c1b"].shape[-1]
    inter = params["p1b"].shape[-1]
    odim = params["cow"].shape[-1]

    # Lane padding (multiples of 128) -> full-width VPU/MXU + unmasked stores.
    idim_p = _round_up(idim, 128)
    bn_p = _round_up(bn_dim, 128)
    hid_p = _round_up(hidden, 128)
    int_p = _round_up(inter, 128)
    odim_p = _round_up(odim, 128)

    f32, bf16 = jnp.float32, jnp.bfloat16

    # conv_in weights stay tap-major 3D (no im2col reshape), bf16.
    c1w = _pad_to(params["c1w"], (3, idim_p, bn_p)).astype(bf16)
    c2w = _pad_to(params["c2w"], (3, bn_p, hid_p)).astype(bf16)
    c1b = _pad_to(params["c1b"], (1, bn_p)).astype(f32)
    c2b = _pad_to(params["c2b"], (1, hid_p)).astype(f32)

    # Pack all small per-layer hid-wide tensors into one array:
    # rows [0:K] = dw taps, K = dwb, K+1 = lnw, K+2 = lnb, K+3 = p2b, K+4 = gamma.
    pk = jnp.concatenate(
        [params["dww"], params["dwb"], params["lnw"], params["lnb"],
         params["p2b"], params["g"]], axis=1)                   # (L, K+5, hidden)
    pk = _pad_to(pk, (n_layer, K + 5, hid_p)).astype(f32)

    p1w = _pad_to(params["p1w"], (n_layer, hid_p, int_p)).astype(bf16)
    p1b = _pad_to(params["p1b"], (n_layer, 1, int_p)).astype(f32)
    p2w = _pad_to(params["p2w"], (n_layer, int_p, hid_p)).astype(bf16)
    cow = _pad_to(params["cow"], (hid_p, odim_p)).astype(bf16)

    pad = dilation * (K // 2)
    left = _round_up(max(pad, 1), 8)        # sublane-aligned start of live rows
    scr_rows = left + T + pad
    scr_rows_pad = _round_up(scr_rows, 8)
    pk_rows = _round_up(K + 5, 8)

    # ---- generation-aware VMEM budget & batch-tile selection ----------------
    try:
        info = pltpu.get_tpu_info()
        vmem_cap = int(getattr(info, "vmem_capacity_bytes", 64 * 2**20))
    except Exception:
        vmem_cap = 64 * 2**20               # conservative (v7x) fallback

    def est_bytes(bt):
        rows = bt * T
        b = 0
        b += 2 * bt * T * idim_p * 2                        # x (bf16, dbl buf)
        b += 2 * 3 * (idim_p * bn_p + bn_p * hid_p) * 2     # conv_in weights
        b += 2 * (bn_p + hid_p + int_p) * 4                 # small bias rows
        b += 2 * pk_rows * hid_p * 4                        # packed per-layer vecs
        b += 2 * 2 * hid_p * int_p * 2                      # p1w + p2w (bf16)
        b += 2 * hid_p * odim_p * 2                         # conv_out weight
        b += 2 * bt * T * odim_p * 4                        # output (f32)
        b += bt * scr_rows_pad * hid_p * 4                  # carried activation
        b += rows * (4 * hid_p + int_p) * 4                 # block temporaries
        b += rows * 2 * (idim_p + bn_p) * 4                 # conv_in shifted views
        return b

    budget = int(vmem_cap * 0.7)
    b_tile = B
    while b_tile > 1 and est_bytes(b_tile) > budget:
        b_tile -= 1
    # TODO(synk): if B == 1 and T is very long, also tile the time axis (with
    # dwconv halos) -- not required at these shapes.
    nb = -(-B // b_tile)
    b_pad = nb * b_tile

    vmem_limit = int(min(vmem_cap * 0.85,
                         max(32 * 2**20, est_bytes(b_tile) * 1.3)))

    # Input in bf16 (only ever feeds bf16 matmuls) -> half the HBM->VMEM bytes.
    x_p = _pad_to(x_btc, (b_pad, T, idim_p)).astype(bf16)

    kern = functools.partial(
        _dvae_decoder_kernel,
        n_layer=n_layer, kernel=K, dilation=dilation,
        true_hidden=hidden, pad=pad, left=left)

    # Per-layer stacks stream one layer per layer step (fetched once per batch
    # block, not once per batch element); conv_in/conv_out weights and x keep a
    # constant block index along the layer axis so they are fetched once.
    in_specs = [
        pl.BlockSpec((b_tile, T, idim_p), lambda nb, l: (nb, 0, 0)),   # x
        pl.BlockSpec((3, idim_p, bn_p), lambda nb, l: (0, 0, 0)),      # c1w
        pl.BlockSpec((1, bn_p), lambda nb, l: (0, 0)),                 # c1b
        pl.BlockSpec((3, bn_p, hid_p), lambda nb, l: (0, 0, 0)),       # c2w
        pl.BlockSpec((1, hid_p), lambda nb, l: (0, 0)),                # c2b
        pl.BlockSpec((1, K + 5, hid_p), lambda nb, l: (l, 0, 0)),      # packed vecs
        pl.BlockSpec((1, hid_p, int_p), lambda nb, l: (l, 0, 0)),      # p1w
        pl.BlockSpec((1, 1, int_p), lambda nb, l: (l, 0, 0)),          # p1b
        pl.BlockSpec((1, int_p, hid_p), lambda nb, l: (l, 0, 0)),      # p2w
        pl.BlockSpec((hid_p, odim_p), lambda nb, l: (0, 0)),           # cow
    ]
    out_specs = pl.BlockSpec((b_tile, T, odim_p), lambda nb, l: (nb, 0, 0))

    out_btc = pl.pallas_call(
        kern,
        out_shape=jax.ShapeDtypeStruct((b_pad, T, odim_p), f32),
        grid=(nb, n_layer),
        in_specs=in_specs,
        out_specs=out_specs,
        scratch_shapes=[pltpu.VMEM((b_tile, scr_rows, hid_p), f32)],
        compiler_params=pltpu.CompilerParams(
            dimension_semantics=("parallel", "arbitrary"),
            vmem_limit_bytes=vmem_limit),
    )(x_p, c1w, c1b, c2w, c2b, pk, p1w, p1b, p2w, cow)

    return out_btc[:B, :, :odim]


def dvae_decoder_pallas(x_ncl, params, *, dilation):
    """PyTorch-compatible NCL wrapper: (B, idim, T) f32 -> (B, odim, T) f32."""
    # TODO(synk): accept/produce channel-last at the API boundary to avoid
    # these two full-HBM transpose passes (dvae_decoder_pallas_nlc does).
    out_btc = dvae_decoder_pallas_nlc(
        jnp.transpose(x_ncl, (0, 2, 1)).astype(jnp.float32), params,
        dilation=dilation)
    return jnp.transpose(out_btc, (0, 2, 1))


def make_params(key, idim, odim, n_layer, bn_dim, hidden, kernel):
    """Deterministic synthetic parameters in kernel-friendly (unpadded) layouts."""
    inter = hidden * 4
    keys = jax.random.split(key, 16)
    nrm = lambda k, s: (0.05 * jax.random.normal(k, s)).astype(jnp.float32)
    return {
        # conv_in[0]: torch weight (bn, idim, 3) -> taps (3, idim, bn)
        "c1w": nrm(keys[0], (3, idim, bn_dim)),
        "c1b": nrm(keys[1], (1, bn_dim)),
        # conv_in[2]: (hidden, bn, 3) -> (3, bn, hidden)
        "c2w": nrm(keys[2], (3, bn_dim, hidden)),
        "c2b": nrm(keys[3], (1, hidden)),
        # per-layer ConvNeXt blocks (stacked on leading layer axis)
        "dww": nrm(keys[4], (n_layer, kernel, hidden)),   # depthwise (h,1,k) -> (k,h)
        "dwb": nrm(keys[5], (n_layer, 1, hidden)),
        "lnw": jnp.ones((n_layer, 1, hidden), jnp.float32),
        "lnb": jnp.zeros((n_layer, 1, hidden), jnp.float32),
        "p1w": nrm(keys[6], (n_layer, hidden, inter)),    # torch (inter,hidden) -> T
        "p1b": nrm(keys[7], (n_layer, 1, inter)),
        "p2w": nrm(keys[8], (n_layer, inter, hidden)),
        "p2b": nrm(keys[9], (n_layer, 1, hidden)),
        "g": jnp.full((n_layer, 1, hidden), 1e-6, jnp.float32),
        # conv_out: (odim, hidden, 1) -> (hidden, odim)
        "cow": nrm(keys[10], (hidden, odim)),
    }


def ref_forward(x_ncl, p, *, dilation):
    """Pure-JAX f32 reference mirroring the PyTorch module (erf GELU)."""
    x = jnp.transpose(x_ncl, (0, 2, 1))  # (B, T, C)
    B, T, _ = x.shape

    def conv3(xin, w, b):
        xp = jnp.pad(xin, ((0, 0), (1, 1), (0, 0)))
        out = sum(jnp.einsum("btc,cd->btd", xp[:, j:j + T, :], w[j]) for j in range(3))
        return out + b

    y = conv3(x, p["c1w"], p["c1b"])
    y = _gelu_erf(y)
    y = conv3(y, p["c2w"], p["c2b"])
    n_layer, K, H = p["dww"].shape
    pad = dilation * (K // 2)
    for l in range(n_layer):
        res = y
        yp = jnp.pad(y, ((0, 0), (pad, pad), (0, 0)))
        yd = sum(yp[:, j * dilation:j * dilation + T, :] * p["dww"][l, j]
                 for j in range(K)) + p["dwb"][l]
        mean = yd.mean(-1, keepdims=True)
        var = ((yd - mean) ** 2).mean(-1, keepdims=True)
        yn = (yd - mean) / jnp.sqrt(var + 1e-6) * p["lnw"][l] + p["lnb"][l]
        h = _gelu_erf(yn @ p["p1w"][l] + p["p1b"][l])
        h = h @ p["p2w"][l] + p["p2b"][l]
        h = h * p["g"][l]
        y = h + res
    out = y @ p["cow"]
    return jnp.transpose(out, (0, 2, 1))


if __name__ == "__main__":
    # Small, forward-consistent shapes.
    B, idim, odim, T = 2, 8, 8, 16
    n_layer, bn_dim, hidden, kernel, dilation = 2, 16, 32, 7, 2

    key = jax.random.PRNGKey(0)
    kx, kp = jax.random.split(key)
    x = jax.random.normal(kx, (B, idim, T), dtype=jnp.float32)   # PyTorch NCL input
    params = make_params(kp, idim, odim, n_layer, bn_dim, hidden, kernel)

    out = dvae_decoder_pallas(x, params, dilation=dilation)
    out = jax.block_until_ready(out)

    ref = jax.block_until_ready(ref_forward(x, params, dilation=dilation))
    assert out.shape == (B, odim, T)
    max_err = float(jnp.max(jnp.abs(out - ref)))
    # bf16 matmuls (f32 accumulation) + tanh-approx GELU vs the f32/erf
    # reference -> loosened tolerance.
    assert jnp.allclose(out, ref, rtol=5e-2, atol=5e-3), f"mismatch, max_abs_err={max_err}"

    print("KERNEL_OK")
</pallas_src>

<mosaic_0001>
module attributes {stable_mosaic.version = 11 : i64} {
  func.func @_dvae_decoder_kernel(%arg0: i32, %arg1: i32, %arg2: memref<2x16x128xbf16, #tpu.memory_space<vmem>>, %arg3: memref<3x128x128xbf16, #tpu.memory_space<vmem>>, %arg4: memref<1x128xf32, #tpu.memory_space<vmem>>, %arg5: memref<3x128x128xbf16, #tpu.memory_space<vmem>>, %arg6: memref<1x128xf32, #tpu.memory_space<vmem>>, %arg7: memref<1x12x128xf32, #tpu.memory_space<vmem>>, %arg8: memref<1x128x128xbf16, #tpu.memory_space<vmem>>, %arg9: memref<1x1x128xf32, #tpu.memory_space<vmem>>, %arg10: memref<1x128x128xbf16, #tpu.memory_space<vmem>>, %arg11: memref<128x128xbf16, #tpu.memory_space<vmem>>, %arg12: memref<2x16x128xf32, #tpu.memory_space<vmem>>, %arg13: memref<2x30x128xf32, #tpu.memory_space<vmem>>) attributes {dimension_semantics = [#tpu.dimension_semantics<parallel>, #tpu.dimension_semantics<arbitrary>], iteration_bounds = array<i64: 1, 2>, scalar_prefetch = 0 : i64, scratch_operands = 1 : i64, tpu.core_type = #tpu.core_type<tc>, window_params = [{transform_indices = @transform_0, window_bounds = array<i64: 2, 16, 128>}, {pipeline_mode = #tpu.pipeline_mode<synchronous>, transform_indices = @transform_1, window_bounds = array<i64: 3, 128, 128>}, {pipeline_mode = #tpu.pipeline_mode<synchronous>, transform_indices = @transform_2, window_bounds = array<i64: 1, 128>}, {pipeline_mode = #tpu.pipeline_mode<synchronous>, transform_indices = @transform_3, window_bounds = array<i64: 3, 128, 128>}, {pipeline_mode = #tpu.pipeline_mode<synchronous>, transform_indices = @transform_4, window_bounds = array<i64: 1, 128>}, {transform_indices = @transform_5, window_bounds = array<i64: 1, 12, 128>}, {transform_indices = @transform_6, window_bounds = array<i64: 1, 128, 128>}, {transform_indices = @transform_7, window_bounds = array<i64: 1, 1, 128>}, {transform_indices = @transform_8, window_bounds = array<i64: 1, 128, 128>}, {pipeline_mode = #tpu.pipeline_mode<synchronous>, transform_indices = @transform_9, window_bounds = array<i64: 128, 128>}, {transform_indices = @transform_10, window_bounds = array<i64: 2, 16, 128>}]} {
    %c0_i32 = arith.constant 0 : i32
    %0 = arith.cmpi eq, %arg1, %c0_i32 : i32
    %1 = arith.extui %0 : i1 to i32
    %c0_i32_0 = arith.constant 0 : i32
    %2 = arith.cmpi ne, %1, %c0_i32_0 : i32
    scf.if %2 {
      %cst_44 = arith.constant 0.000000e+00 : f32
      %119 = vector.broadcast %cst_44 : f32 to vector<2x6x128xf32>
      %c0_45 = arith.constant 0 : index
      %c2_46 = arith.constant 2 : index
      %c0_47 = arith.constant 0 : index
      %120 = vector.load %arg13[%c0_45, %c2_46, %c0_47] : memref<2x30x128xf32, #tpu.memory_space<vmem>>, vector<2x6x128xf32>
      tpu.vector_store %arg13[%c0_45, %c2_46, %c0_47], %119 {strides = array<i32>} : memref<2x30x128xf32, #tpu.memory_space<vmem>>, vector<2x6x128xf32>,
      %cst_48 = arith.constant 0.000000e+00 : f32
      %121 = vector.broadcast %cst_48 : f32 to vector<2x6x128xf32>
      %c0_49 = arith.constant 0 : index
      %c24 = arith.constant 24 : index
      %c0_50 = arith.constant 0 : index
      %122 = vector.load %arg13[%c0_49, %c24, %c0_50] : memref<2x30x128xf32, #tpu.memory_space<vmem>>, vector<2x6x128xf32>
      tpu.vector_store %arg13[%c0_49, %c24, %c0_50], %121 {strides = array<i32>} : memref<2x30x128xf32, #tpu.memory_space<vmem>>, vector<2x6x128xf32>,
      %c0_51 = arith.constant 0 : index
      %c0_52 = arith.constant 0 : index
      %c0_53 = arith.constant 0 : index
      %123 = vector.load %arg2[%c0_51, %c0_52, %c0_53] : memref<2x16x128xbf16, #tpu.memory_space<vmem>>, vector<2x16x128xbf16>
      %124 = arith.extf %123 : vector<2x16x128xbf16> to vector<2x16x128xf32>
      %c0_54 = arith.constant 0 : index
      %c0_55 = arith.constant 0 : index
      %125 = vector.load %arg4[%c0_54, %c0_55] : memref<1x128xf32, #tpu.memory_space<vmem>>, vector<1x128xf32>
      %cst_56 = arith.constant 0.000000e+00 : f32
      %126 = vector.broadcast %cst_56 : f32 to vector<2x1x128xf32>
      %127 = vector.extract_strided_slice %124 {offsets = [0, 0, 0], sizes = [2, 15, 128], strides = [1, 1, 1]} : vector<2x16x128xf32> to vector<2x15x128xf32>
      %128 = tpu.concatenate %126, %127 in 1 : vector<2x1x128xf32>, vector<2x15x128xf32> -> vector<2x16x128xf32>
      %129 = vector.extract_strided_slice %124 {offsets = [0, 1, 0], sizes = [2, 15, 128], strides = [1, 1, 1]} : vector<2x16x128xf32> to vector<2x15x128xf32>
      %130 = tpu.concatenate %129, %126 in 1 : vector<2x15x128xf32>, vector<2x1x128xf32> -> vector<2x16x128xf32>
      %c0_57 = arith.constant 0 : index
      %c0_58 = arith.constant 0 : index
      %c0_59 = arith.constant 0 : index
      %131 = vector.load %arg3[%c0_57, %c0_58, %c0_59] : memref<3x128x128xbf16, #tpu.memory_space<vmem>>, vector<1x128x128xbf16>
      %132 = vector.shape_cast %131 : vector<1x128x128xbf16> to vector<128x128xbf16>
      %133 = vector.shape_cast %128 : vector<2x16x128xf32> to vector<32x128xf32>
      %134 = arith.truncf %133 : vector<32x128xf32> to vector<32x128xbf16>
      %cst_60 = arith.constant dense<0.000000e+00> : vector<32x128xf32>
      %135 = tpu.matmul %134, %132, %cst_60 {dimension_numbers = #tpu.dot_dimension_numbers<[1], [0], [0], [1], [0, 0, 1, 1], [], []>} : vector<32x128xbf16>, vector<128x128xbf16>, vector<32x128xf32> -> vector<32x128xf32>
      %c1 = arith.constant 1 : index
      %c0_61 = arith.constant 0 : index
      %c0_62 = arith.constant 0 : index
      %136 = vector.load %arg3[%c1, %c0_61, %c0_62] : memref<3x128x128xbf16, #tpu.memory_space<vmem>>, vector<1x128x128xbf16>
      %137 = vector.shape_cast %136 : vector<1x128x128xbf16> to vector<128x128xbf16>
      %138 = vector.shape_cast %124 : vector<2x16x128xf32> to vector<32x128xf32>
      %139 = arith.truncf %138 : vector<32x128xf32> to vector<32x128xbf16>
      %cst_63 = arith.constant dense<0.000000e+00> : vector<32x128xf32>
      %140 = tpu.matmul %139, %137, %cst_63 {dimension_numbers = #tpu.dot_dimension_numbers<[1], [0], [0], [1], [0, 0, 1, 1], [], []>} : vector<32x128xbf16>, vector<128x128xbf16>, vector<32x128xf32> -> vector<32x128xf32>
      %141 = arith.addf %135, %140 : vector<32x128xf32>
      %c2_64 = arith.constant 2 : index
      %c0_65 = arith.constant 0 : index
      %c0_66 = arith.constant 0 : index
      %142 = vector.load %arg3[%c2_64, %c0_65, %c0_66] : memref<3x128x128xbf16, #tpu.memory_space<vmem>>, vector<1x128x128xbf16>
      %143 = vector.shape_cast %142 : vector<1x128x128xbf16> to vector<128x128xbf16>
      %144 = vector.shape_cast %130 : vector<2x16x128xf32> to vector<32x128xf32>
      %145 = arith.truncf %144 : vector<32x128xf32> to vector<32x128xbf16>
      %cst_67 = arith.constant dense<0.000000e+00> : vector<32x128xf32>
      %146 = tpu.matmul %145, %143, %cst_67 {dimension_numbers = #tpu.dot_dimension_numbers<[1], [0], [0], [1], [0, 0, 1, 1], [], []>} : vector<32x128xbf16>, vector<128x128xbf16>, vector<32x128xf32> -> vector<32x128xf32>
      %147 = arith.addf %141, %146 : vector<32x128xf32>
      %148 = vector.broadcast %125 : vector<1x128xf32> to vector<32x128xf32>
      %149 = arith.addf %147, %148 : vector<32x128xf32>
      %cst_68 = arith.constant 5.000000e-01 : f32
      %150 = vector.broadcast %cst_68 : f32 to vector<32x128xf32>
      %151 = arith.mulf %150, %149 : vector<32x128xf32>
      %cst_69 = arith.constant 4.471500e-02 : f32
      %152 = vector.broadcast %cst_69 : f32 to vector<32x128xf32>
      %153 = arith.mulf %152, %149 : vector<32x128xf32>
      %154 = arith.mulf %153, %149 : vector<32x128xf32>
      %155 = arith.mulf %154, %149 : vector<32x128xf32>
      %156 = arith.addf %149, %155 : vector<32x128xf32>
      %cst_70 = arith.constant 0.797884583 : f32
      %157 = vector.broadcast %cst_70 : f32 to vector<32x128xf32>
      %158 = arith.mulf %157, %156 : vector<32x128xf32>
      %159 = math.tanh %158 : vector<32x128xf32>
      %cst_71 = arith.constant 1.000000e+00 : f32
      %160 = vector.broadcast %cst_71 : f32 to vector<32x128xf32>
      %161 = arith.addf %160, %159 : vector<32x128xf32>
      %162 = arith.mulf %151, %161 : vector<32x128xf32>
      %163 = vector.shape_cast %162 : vector<32x128xf32> to vector<2x16x128xf32>
      %c0_72 = arith.constant 0 : index
      %c0_73 = arith.constant 0 : index
      %164 = vector.load %arg6[%c0_72, %c0_73] : memref<1x128xf32, #tpu.memory_space<vmem>>, vector<1x128xf32>
      %cst_74 = arith.constant 0.000000e+00 : f32
      %165 = vector.broadcast %cst_74 : f32 to vector<2x1x128xf32>
      %166 = vector.extract_strided_slice %163 {offsets = [0, 0, 0], sizes = [2, 15, 128], strides = [1, 1, 1]} : vector<2x16x128xf32> to vector<2x15x128xf32>
      %167 = tpu.concatenate %165, %166 in 1 : vector<2x1x128xf32>, vector<2x15x128xf32> -> vector<2x16x128xf32>
      %168 = vector.extract_strided_slice %163 {offsets = [0, 1, 0], sizes = [2, 15, 128], strides = [1, 1, 1]} : vector<2x16x128xf32> to vector<2x15x128xf32>
      %169 = tpu.concatenate %168, %165 in 1 : vector<2x15x128xf32>, vector<2x1x128xf32> -> vector<2x16x128xf32>
      %c0_75 = arith.constant 0 : index
      %c0_76 = arith.constant 0 : index
      %c0_77 = arith.constant 0 : index
      %170 = vector.load %arg5[%c0_75, %c0_76, %c0_77] : memref<3x128x128xbf16, #tpu.memory_space<vmem>>, vector<1x128x128xbf16>
      %171 = vector.shape_cast %170 : vector<1x128x128xbf16> to vector<128x128xbf16>
      %172 = vector.shape_cast %167 : vector<2x16x128xf32> to vector<32x128xf32>
      %173 = arith.truncf %172 : vector<32x128xf32> to vector<32x128xbf16>
      %cst_78 = arith.constant dense<0.000000e+00> : vector<32x128xf32>
      %174 = tpu.matmul %173, %171, %cst_78 {dimension_numbers = #tpu.dot_dimension_numbers<[1], [0], [0], [1], [0, 0, 1, 1], [], []>} : vector<32x128xbf16>, vector<128x128xbf16>, vector<32x128xf32> -> vector<32x128xf32>
      %c1_79 = arith.constant 1 : index
      %c0_80 = arith.constant 0 : index
      %c0_81 = arith.constant 0 : index
      %175 = vector.load %arg5[%c1_79, %c0_80, %c0_81] : memref<3x128x128xbf16, #tpu.memory_space<vmem>>, vector<1x128x128xbf16>
      %176 = vector.shape_cast %175 : vector<1x128x128xbf16> to vector<128x128xbf16>
      %177 = vector.shape_cast %163 : vector<2x16x128xf32> to vector<32x128xf32>
      %178 = arith.truncf %177 : vector<32x128xf32> to vector<32x128xbf16>
      %cst_82 = arith.constant dense<0.000000e+00> : vector<32x128xf32>
      %179 = tpu.matmul %178, %176, %cst_82 {dimension_numbers = #tpu.dot_dimension_numbers<[1], [0], [0], [1], [0, 0, 1, 1], [], []>} : vector<32x128xbf16>, vector<128x128xbf16>, vector<32x128xf32> -> vector<32x128xf32>
      %180 = arith.addf %174, %179 : vector<32x128xf32>
      %c2_83 = arith.constant 2 : index
      %c0_84 = arith.constant 0 : index
      %c0_85 = arith.constant 0 : index
      %181 = vector.load %arg5[%c2_83, %c0_84, %c0_85] : memref<3x128x128xbf16, #tpu.memory_space<vmem>>, vector<1x128x128xbf16>
      %182 = vector.shape_cast %181 : vector<1x128x128xbf16> to vector<128x128xbf16>
      %183 = vector.shape_cast %169 : vector<2x16x128xf32> to vector<32x128xf32>
      %184 = arith.truncf %183 : vector<32x128xf32> to vector<32x128xbf16>
      %cst_86 = arith.constant dense<0.000000e+00> : vector<32x128xf32>
      %185 = tpu.matmul %184, %182, %cst_86 {dimension_numbers = #tpu.dot_dimension_numbers<[1], [0], [0], [1], [0, 0, 1, 1], [], []>} : vector<32x128xbf16>, vector<128x128xbf16>, vector<32x128xf32> -> vector<32x128xf32>
      %186 = arith.addf %180, %185 : vector<32x128xf32>
      %187 = vector.broadcast %164 : vector<1x128xf32> to vector<32x128xf32>
      %188 = arith.addf %186, %187 : vector<32x128xf32>
      %189 = vector.shape_cast %188 : vector<32x128xf32> to vector<2x16x128xf32>
      %c0_87 = arith.constant 0 : index
      %c8_88 = arith.constant 8 : index
      %c0_89 = arith.constant 0 : index
      %190 = vector.load %arg13[%c0_87, %c8_88, %c0_89] : memref<2x30x128xf32, #tpu.memory_space<vmem>>, vector<2x16x128xf32>
      tpu.vector_store %arg13[%c0_87, %c8_88, %c0_89], %189 {strides = array<i32>} : memref<2x30x128xf32, #tpu.memory_space<vmem>>, vector<2x16x128xf32>,
    } else {
    }
    %c0 = arith.constant 0 : index
    %c0_1 = arith.constant 0 : index
    %c0_2 = arith.constant 0 : index
    %3 = vector.load %arg7[%c0, %c0_1, %c0_2] : memref<1x12x128xf32, #tpu.memory_space<vmem>>, vector<1x12x128xf32>
    %4 = vector.shape_cast %3 : vector<1x12x128xf32> to vector<12x128xf32>
    %c0_3 = arith.constant 0 : index
    %c2 = arith.constant 2 : index
    %c0_4 = arith.constant 0 : index
    %5 = vector.load %arg13[%c0_3, %c2, %c0_4] : memref<2x30x128xf32, #tpu.memory_space<vmem>>, vector<2x16x128xf32>
    %6 = vector.extract_strided_slice %4 {offsets = [0, 0], sizes = [1, 128], strides = [1, 1]} : vector<12x128xf32> to vector<1x128xf32>
    %7 = vector.shape_cast %6 : vector<1x128xf32> to vector<1x1x128xf32>
    %8 = vector.broadcast %7 : vector<1x1x128xf32> to vector<2x16x128xf32>
    %9 = arith.mulf %5, %8 : vector<2x16x128xf32>
    %10 = vector.extract_strided_slice %4 {offsets = [7, 0], sizes = [1, 128], strides = [1, 1]} : vector<12x128xf32> to vector<1x128xf32>
    %11 = vector.shape_cast %10 : vector<1x128xf32> to vector<1x1x128xf32>
    %12 = vector.broadcast %11 : vector<1x1x128xf32> to vector<2x16x128xf32>
    %13 = arith.addf %9, %12 : vector<2x16x128xf32>
    %c0_5 = arith.constant 0 : index
    %c4 = arith.constant 4 : index
    %c0_6 = arith.constant 0 : index
    %14 = vector.load %arg13[%c0_5, %c4, %c0_6] : memref<2x30x128xf32, #tpu.memory_space<vmem>>, vector<2x16x128xf32>
    %15 = vector.extract_strided_slice %4 {offsets = [1, 0], sizes = [1, 128], strides = [1, 1]} : vector<12x128xf32> to vector<1x128xf32>
    %16 = vector.shape_cast %15 : vector<1x128xf32> to vector<1x1x128xf32>
    %17 = vector.broadcast %16 : vector<1x1x128xf32> to vector<2x16x128xf32>
    %18 = arith.mulf %14, %17 : vector<2x16x128xf32>
    %19 = arith.addf %13, %18 : vector<2x16x128xf32>
    %c0_7 = arith.constant 0 : index
    %c6 = arith.constant 6 : index
    %c0_8 = arith.constant 0 : index
    %20 = vector.load %arg13[%c0_7, %c6, %c0_8] : memref<2x30x128xf32, #tpu.memory_space<vmem>>, vector<2x16x128xf32>
    %21 = vector.extract_strided_slice %4 {offsets = [2, 0], sizes = [1, 128], strides = [1, 1]} : vector<12x128xf32> to vector<1x128xf32>
    %22 = vector.shape_cast %21 : vector<1x128xf32> to vector<1x1x128xf32>
    %23 = vector.broadcast %22 : vector<1x1x128xf32> to vector<2x16x128xf32>
    %24 = arith.mulf %20, %23 : vector<2x16x128xf32>
    %25 = arith.addf %19, %24 : vector<2x16x128xf32>
    %c0_9 = arith.constant 0 : index
    %c8 = arith.constant 8 : index
    %c0_10 = arith.constant 0 : index
    %26 = vector.load %arg13[%c0_9, %c8, %c0_10] : memref<2x30x128xf32, #tpu.memory_space<vmem>>, vector<2x16x128xf32>
    %27 = vector.extract_strided_slice %4 {offsets = [3, 0], sizes = [1, 128], strides = [1, 1]} : vector<12x128xf32> to vector<1x128xf32>
    %28 = vector.shape_cast %27 : vector<1x128xf32> to vector<1x1x128xf32>
    %29 = vector.broadcast %28 : vector<1x1x128xf32> to vector<2x16x128xf32>
    %30 = arith.mulf %26, %29 : vector<2x16x128xf32>
    %31 = arith.addf %25, %30 : vector<2x16x128xf32>
    %c0_11 = arith.constant 0 : index
    %c10 = arith.constant 10 : index
    %c0_12 = arith.constant 0 : index
    %32 = vector.load %arg13[%c0_11, %c10, %c0_12] : memref<2x30x128xf32, #tpu.memory_space<vmem>>, vector<2x16x128xf32>
    %33 = vector.extract_strided_slice %4 {offsets = [4, 0], sizes = [1, 128], strides = [1, 1]} : vector<12x128xf32> to vector<1x128xf32>
    %34 = vector.shape_cast %33 : vector<1x128xf32> to vector<1x1x128xf32>
    %35 = vector.broadcast %34 : vector<1x1x128xf32> to vector<2x16x128xf32>
    %36 = arith.mulf %32, %35 : vector<2x16x128xf32>
    %37 = arith.addf %31, %36 : vector<2x16x128xf32>
    %c0_13 = arith.constant 0 : index
    %c12 = arith.constant 12 : index
    %c0_14 = arith.constant 0 : index
    %38 = vector.load %arg13[%c0_13, %c12, %c0_14] : memref<2x30x128xf32, #tpu.memory_space<vmem>>, vector<2x16x128xf32>
    %39 = vector.extract_strided_slice %4 {offsets = [5, 0], sizes = [1, 128], strides = [1, 1]} : vector<12x128xf32> to vector<1x128xf32>
    %40 = vector.shape_cast %39 : vector<1x128xf32> to vector<1x1x128xf32>
    %41 = vector.broadcast %40 : vector<1x1x128xf32> to vector<2x16x128xf32>
    %42 = arith.mulf %38, %41 : vector<2x16x128xf32>
    %43 = arith.addf %37, %42 : vector<2x16x128xf32>
    %c0_15 = arith.constant 0 : index
    %c14 = arith.constant 14 : index
    %c0_16 = arith.constant 0 : index
    %44 = vector.load %arg13[%c0_15, %c14, %c0_16] : memref<2x30x128xf32, #tpu.memory_space<vmem>>, vector<2x16x128xf32>
    %45 = vector.extract_strided_slice %4 {offsets = [6, 0], sizes = [1, 128], strides = [1, 1]} : vector<12x128xf32> to vector<1x128xf32>
    %46 = vector.shape_cast %45 : vector<1x128xf32> to vector<1x1x128xf32>
    %47 = vector.broadcast %46 : vector<1x1x128xf32> to vector<2x16x128xf32>
    %48 = arith.mulf %44, %47 : vector<2x16x128xf32>
    %49 = arith.addf %43, %48 : vector<2x16x128xf32>
    %50 = vector.shape_cast %49 : vector<2x16x128xf32> to vector<32x128xf32>
    %c0_17 = arith.constant 0 : index
    %c8_18 = arith.constant 8 : index
    %c0_19 = arith.constant 0 : index
    %51 = vector.load %arg13[%c0_17, %c8_18, %c0_19] : memref<2x30x128xf32, #tpu.memory_space<vmem>>, vector<2x16x128xf32>
    %52 = vector.shape_cast %51 : vector<2x16x128xf32> to vector<32x128xf32>
    %53 = tpu.iota {dimensions = array<i32: 1>} : vector<1x128xi32>
    %c32_i32 = arith.constant 32 : i32
    %54 = vector.broadcast %c32_i32 : i32 to vector<1x128xi32>
    %55 = arith.cmpi slt, %53, %54 : vector<1x128xi32>
    %cst = arith.constant dense<0.000000e+00> : vector<32xf32>
    %56 = vector.multi_reduction <add>, %50, %cst [1] : vector<32x128xf32> to vector<32xf32>
    %57 = vector.shape_cast %56 : vector<32xf32> to vector<32x1xf32>
    %cst_20 = arith.constant 3.125000e-02 : f32
    %58 = vector.broadcast %cst_20 : f32 to vector<32x1xf32>
    %59 = arith.mulf %57, %58 : vector<32x1xf32>
    %60 = vector.broadcast %59 : vector<32x1xf32> to vector<32x128xf32>
    %61 = arith.subf %50, %60 : vector<32x128xf32>
    %cst_21 = arith.constant 0.000000e+00 : f32
    %62 = vector.shape_cast %55 : vector<1x128xi1> to vector<1x128xi1>
    %63 = vector.broadcast %62 : vector<1x128xi1> to vector<32x128xi1>
    %64 = vector.broadcast %cst_21 : f32 to vector<32x128xf32>
    %65 = arith.select %63, %61, %64 : vector<32x128xi1>, vector<32x128xf32>
    %66 = arith.mulf %65, %65 : vector<32x128xf32>
    %cst_22 = arith.constant dense<0.000000e+00> : vector<32xf32>
    %67 = vector.multi_reduction <add>, %66, %cst_22 [1] : vector<32x128xf32> to vector<32xf32>
    %68 = vector.shape_cast %67 : vector<32xf32> to vector<32x1xf32>
    %cst_23 = arith.constant 3.125000e-02 : f32
    %69 = vector.broadcast %cst_23 : f32 to vector<32x1xf32>
    %70 = arith.mulf %68, %69 : vector<32x1xf32>
    %cst_24 = arith.constant 9.99999997E-7 : f32
    %71 = vector.broadcast %cst_24 : f32 to vector<32x1xf32>
    %72 = arith.addf %70, %71 : vector<32x1xf32>
    %73 = math.rsqrt %72 : vector<32x1xf32>
    %74 = vector.broadcast %73 : vector<32x1xf32> to vector<32x128xf32>
    %75 = arith.mulf %65, %74 : vector<32x128xf32>
    %76 = vector.extract_strided_slice %4 {offsets = [8, 0], sizes = [1, 128], strides = [1, 1]} : vector<12x128xf32> to vector<1x128xf32>
    %77 = vector.broadcast %76 : vector<1x128xf32> to vector<32x128xf32>
    %78 = arith.mulf %75, %77 : vector<32x128xf32>
    %79 = vector.extract_strided_slice %4 {offsets = [9, 0], sizes = [1, 128], strides = [1, 1]} : vector<12x128xf32> to vector<1x128xf32>
    %80 = vector.broadcast %79 : vector<1x128xf32> to vector<32x128xf32>
    %81 = arith.addf %78, %80 : vector<32x128xf32>
    %82 = arith.truncf %81 : vector<32x128xf32> to vector<32x128xbf16>
    %c0_25 = arith.constant 0 : index
    %c0_26 = arith.constant 0 : index
    %c0_27 = arith.constant 0 : index
    %83 = vector.load %arg8[%c0_25, %c0_26, %c0_27] : memref<1x128x128xbf16, #tpu.memory_space<vmem>>, vector<1x128x128xbf16>
    %84 = vector.shape_cast %83 : vector<1x128x128xbf16> to vector<128x128xbf16>
    %cst_28 = arith.constant dense<0.000000e+00> : vector<32x128xf32>
    %85 = tpu.matmul %82, %84, %cst_28 {dimension_numbers = #tpu.dot_dimension_numbers<[1], [0], [0], [1], [0, 0, 1, 1], [], []>} : vector<32x128xbf16>, vector<128x128xbf16>, vector<32x128xf32> -> vector<32x128xf32>
    %c0_29 = arith.constant 0 : index
    %c0_30 = arith.constant 0 : index
    %c0_31 = arith.constant 0 : index
    %86 = vector.load %arg9[%c0_29, %c0_30, %c0_31] : memref<1x1x128xf32, #tpu.memory_space<vmem>>, vector<1x1x128xf32>
    %87 = vector.shape_cast %86 : vector<1x1x128xf32> to vector<1x128xf32>
    %88 = vector.broadcast %87 : vector<1x128xf32> to vector<32x128xf32>
    %89 = arith.addf %85, %88 : vector<32x128xf32>
    %cst_32 = arith.constant 5.000000e-01 : f32
    %90 = vector.broadcast %cst_32 : f32 to vector<32x128xf32>
    %91 = arith.mulf %90, %89 : vector<32x128xf32>
    %cst_33 = arith.constant 4.471500e-02 : f32
    %92 = vector.broadcast %cst_33 : f32 to vector<32x128xf32>
    %93 = arith.mulf %92, %89 : vector<32x128xf32>
    %94 = arith.mulf %93, %89 : vector<32x128xf32>
    %95 = arith.mulf %94, %89 : vector<32x128xf32>
    %96 = arith.addf %89, %95 : vector<32x128xf32>
    %cst_34 = arith.constant 0.797884583 : f32
    %97 = vector.broadcast %cst_34 : f32 to vector<32x128xf32>
    %98 = arith.mulf %97, %96 : vector<32x128xf32>
    %99 = math.tanh %98 : vector<32x128xf32>
    %cst_35 = arith.constant 1.000000e+00 : f32
    %100 = vector.broadcast %cst_35 : f32 to vector<32x128xf32>
    %101 = arith.addf %100, %99 : vector<32x128xf32>
    %102 = arith.mulf %91, %101 : vector<32x128xf32>
    %103 = arith.truncf %102 : vector<32x128xf32> to vector<32x128xbf16>
    %c0_36 = arith.constant 0 : index
    %c0_37 = arith.constant 0 : index
    %c0_38 = arith.constant 0 : index
    %104 = vector.load %arg10[%c0_36, %c0_37, %c0_38] : memref<1x128x128xbf16, #tpu.memory_space<vmem>>, vector<1x128x128xbf16>
    %105 = vector.shape_cast %104 : vector<1x128x128xbf16> to vector<128x128xbf16>
    %cst_39 = arith.constant dense<0.000000e+00> : vector<32x128xf32>
    %106 = tpu.matmul %103, %105, %cst_39 {dimension_numbers = #tpu.dot_dimension_numbers<[1], [0], [0], [1], [0, 0, 1, 1], [], []>} : vector<32x128xbf16>, vector<128x128xbf16>, vector<32x128xf32> -> vector<32x128xf32>
    %107 = vector.extract_strided_slice %4 {offsets = [10, 0], sizes = [1, 128], strides = [1, 1]} : vector<12x128xf32> to vector<1x128xf32>
    %108 = vector.broadcast %107 : vector<1x128xf32> to vector<32x128xf32>
    %109 = arith.addf %106, %108 : vector<32x128xf32>
    %110 = vector.extract_strided_slice %4 {offsets = [11, 0], sizes = [1, 128], strides = [1, 1]} : vector<12x128xf32> to vector<1x128xf32>
    %111 = vector.broadcast %110 : vector<1x128xf32> to vector<32x128xf32>
    %112 = arith.mulf %109, %111 : vector<32x128xf32>
    %113 = arith.addf %112, %52 : vector<32x128xf32>
    %114 = vector.shape_cast %113 : vector<32x128xf32> to vector<2x16x128xf32>
    %c0_40 = arith.constant 0 : index
    %c8_41 = arith.constant 8 : index
    %c0_42 = arith.constant 0 : index
    %115 = vector.load %arg13[%c0_40, %c8_41, %c0_42] : memref<2x30x128xf32, #tpu.memory_space<vmem>>, vector<2x16x128xf32>
    tpu.vector_store %arg13[%c0_40, %c8_41, %c0_42], %114 {strides = array<i32>} : memref<2x30x128xf32, #tpu.memory_space<vmem>>, vector<2x16x128xf32>,
    %c1_i32 = arith.constant 1 : i32
    %116 = arith.cmpi eq, %arg1, %c1_i32 : i32
    %117 = arith.extui %116 : i1 to i32
    %c0_i32_43 = arith.constant 0 : i32
    %118 = arith.cmpi ne, %117, %c0_i32_43 : i32
    scf.if %118 {
      %119 = arith.truncf %113 : vector<32x128xf32> to vector<32x128xbf16>
      %c0_44 = arith.constant 0 : index
      %c0_45 = arith.constant 0 : index
      %120 = vector.load %arg11[%c0_44, %c0_45] : memref<128x128xbf16, #tpu.memory_space<vmem>>, vector<128x128xbf16>
      %cst_46 = arith.constant dense<0.000000e+00> : vector<32x128xf32>
      %121 = tpu.matmul %119, %120, %cst_46 {dimension_numbers = #tpu.dot_dimension_numbers<[1], [0], [0], [1], [0, 0, 1, 1], [], []>} : vector<32x128xbf16>, vector<128x128xbf16>, vector<32x128xf32> -> vector<32x128xf32>
      %122 = vector.shape_cast %121 : vector<32x128xf32> to vector<2x16x128xf32>
      %c0_47 = arith.constant 0 : index
      %c0_48 = arith.constant 0 : index
      %c0_49 = arith.constant 0 : index
      %123 = vector.load %arg12[%c0_47, %c0_48, %c0_49] : memref<2x16x128xf32, #tpu.memory_space<vmem>>, vector<2x16x128xf32>
      tpu.vector_store %arg12[%c0_47, %c0_48, %c0_49], %122 {strides = array<i32>} : memref<2x16x128xf32, #tpu.memory_space<vmem>>, vector<2x16x128xf32>,
    } else {
    }
    return
  }
  func.func @transform_0(%arg0: i32, %arg1: i32) -> (i32, i32, i32) {
    %c0_i32 = arith.constant 0 : i32
    %c0_i32_0 = arith.constant 0 : i32
    %c0_i32_1 = arith.constant 0 : i32
    return %arg0, %c0_i32, %c0_i32_0 : i32, i32, i32
  }
  func.func @transform_1(%arg0: i32, %arg1: i32) -> (i32, i32, i32) {
    %c0_i32 = arith.constant 0 : i32
    %c0_i32_0 = arith.constant 0 : i32
    %c0_i32_1 = arith.constant 0 : i32
    %c0_i32_2 = arith.constant 0 : i32
    return %c0_i32, %c0_i32_0, %c0_i32_1 : i32, i32, i32
  }
  func.func @transform_2(%arg0: i32, %arg1: i32) -> (i32, i32) {
    %c0_i32 = arith.constant 0 : i32
    %c0_i32_0 = arith.constant 0 : i32
    %c0_i32_1 = arith.constant 0 : i32
    return %c0_i32, %c0_i32_0 : i32, i32
  }
  func.func @transform_3(%arg0: i32, %arg1: i32) -> (i32, i32, i32) {
    %c0_i32 = arith.constant 0 : i32
    %c0_i32_0 = arith.constant 0 : i32
    %c0_i32_1 = arith.constant 0 : i32
    %c0_i32_2 = arith.constant 0 : i32
    return %c0_i32, %c0_i32_0, %c0_i32_1 : i32, i32, i32
  }
  func.func @transform_4(%arg0: i32, %arg1: i32) -> (i32, i32) {
    %c0_i32 = arith.constant 0 : i32
    %c0_i32_0 = arith.constant 0 : i32
    %c0_i32_1 = arith.constant 0 : i32
    return %c0_i32, %c0_i32_0 : i32, i32
  }
  func.func @transform_5(%arg0: i32, %arg1: i32) -> (i32, i32, i32) {
    %c0_i32 = arith.constant 0 : i32
    %c0_i32_0 = arith.constant 0 : i32
    %c0_i32_1 = arith.constant 0 : i32
    return %arg1, %c0_i32, %c0_i32_0 : i32, i32, i32
  }
  func.func @transform_6(%arg0: i32, %arg1: i32) -> (i32, i32, i32) {
    %c0_i32 = arith.constant 0 : i32
    %c0_i32_0 = arith.constant 0 : i32
    %c0_i32_1 = arith.constant 0 : i32
    return %arg1, %c0_i32, %c0_i32_0 : i32, i32, i32
  }
  func.func @transform_7(%arg0: i32, %arg1: i32) -> (i32, i32, i32) {
    %c0_i32 = arith.constant 0 : i32
    %c0_i32_0 = arith.constant 0 : i32
    %c0_i32_1 = arith.constant 0 : i32
    return %arg1, %c0_i32, %c0_i32_0 : i32, i32, i32
  }
  func.func @transform_8(%arg0: i32, %arg1: i32) -> (i32, i32, i32) {
    %c0_i32 = arith.constant 0 : i32
    %c0_i32_0 = arith.constant 0 : i32
    %c0_i32_1 = arith.constant 0 : i32
    return %arg1, %c0_i32, %c0_i32_0 : i32, i32, i32
  }
  func.func @transform_9(%arg0: i32, %arg1: i32) -> (i32, i32) {
    %c0_i32 = arith.constant 0 : i32
    %c0_i32_0 = arith.constant 0 : i32
    %c0_i32_1 = arith.constant 0 : i32
    return %c0_i32, %c0_i32_0 : i32, i32
  }
  func.func @transform_10(%arg0: i32, %arg1: i32) -> (i32, i32, i32) {
    %c0_i32 = arith.constant 0 : i32
    %c0_i32_0 = arith.constant 0 : i32
    %c0_i32_1 = arith.constant 0 : i32
    return %arg0, %c0_i32, %c0_i32_0 : i32, i32, i32
  }
}

</mosaic_0001>

<bundles_post_ra>
// kernel: tpu_custom_call.1
= control target key start
LH: loop header
LB: loop body
LE: loop exit
PB: predicated region body
PF: predicated region fallthrough
CT: control target
= control target key end

     0   :  { %s3417_s0 = inlined_call_operand.vmem [shape: bf16[2,16,128], index: 0, kind: input, shape index: {}]   ;;  %s3418_s1 = inlined_call_operand.hbm [shape: bf16[3,128,128], index: 1, kind: input, shape index: {}]   ;;  %s3419_s2 = inlined_call_operand.vmem [shape: f32[1,128], index: 2, kind: input, shape index: {}]   ;;  %s3420_s3 = inlined_call_operand.hbm [shape: bf16[3,128,128], index: 3, kind: input, shape index: {}]   ;;  %s3421_s4 = inlined_call_operand.vmem [shape: f32[1,128], index: 4, kind: input, shape index: {}]   ;;  %s3422_s5 = inlined_call_operand.vmem [shape: f32[2,12,128], index: 5, kind: input, shape index: {}]   ;;  %s3423_s6 = inlined_call_operand.hbm [shape: bf16[2,128,128], index: 6, kind: input, shape index: {}]   ;;  %s3424_s7 = inlined_call_operand.vmem [shape: f32[2,1,128], index: 7, kind: input, shape index: {}]   ;;  %s3425_s8 = inlined_call_operand.hbm [shape: bf16[2,128,128], index: 8, kind: input, shape index: {}]   ;;  %s3426_s9 = inlined_call_operand.vmem [shape: bf16[128,128], index: 9, kind: input, shape index: {}]   ;;  %s3427_s10 = inlined_call_operand.hbm [shape: f32[2,16,128], index: 10, kind: output, shape index: {}]  }
   0x1   :  { %3445 = sst [smem:[#allocation19_spill]] %s3418_s1 }
   0x2   :  { %3446 = sst [smem:[#allocation20_spill]] %s3421_s4 }
   0x3   :  { %3447 = sst [smem:[#allocation21_spill]] %s3423_s6 }
   0x4   :  { %3448 = sst [smem:[#allocation22_spill]] %s3426_s9 }
   0x5   :  { %3449 = sst [smem:[#allocation23_spill]] %s3427_s10 }
   0x6   :  { %15 = vsyncpa [#allocation4], 0 }
   0x7   :  { %16 = vsyncpa [#allocation7], 0 }
   0x8   :  { %17 = vsyncpa [#allocation5], 0  ;;  %s2979_s13 = smov 0   ;;  %s2981_s14 = smov 0  }
   0x9   :  { %s2983_s15 = smov 0   ;;  %s2985_s16 = smov 0  }
   0xa   :  { %s2987_s17 = smov 0   ;;  %s2989_s18 = smov 0  }
   0xb LB: > { %3450 = sst [smem:[#allocation15_spill]] %s2899_s15  ;;  %s3008_s19 = sadd.s32 4294967295, %s2911_s18   ;;  %s2911_s18 = sphi %s2989_s18, %s23_s18   ;;  %s2907_s17 = sphi %s2987_s17, %s3490_s17   ;;  %s2903_s16 = sphi %s2985_s16, %s3489_s16   ;;  %s2899_s15 = sphi %s2983_s15, %s3485_s15   ;;  %s2895_s14 = sphi %s2981_s14, %s3488_s14   ;;  %s2891_s13 = sphi %s2979_s13, %s3487_s13  }
   0xc   : > { %3451 = sst [smem:[#allocation16_spill]] %s2911_s18  ;;  %p185_p0 = scmp.ne.s32.totalorder %s2899_s15, %s2895_s14 }
   0xd   : > { %p186_p1 = scmp.eq.s32.totalorder %s2911_s18, 0  ;;  %p191_p2 = scmp.ne.s32.totalorder %s2895_s14, %s2891_s13 }
   0xe   : > { %p3428_p3 = scmp.eq.s32.totalorder %s3008_s19, 0  ;;  %p2095_p5 = scmp.ge.s32.totalorder %s2911_s18, 1 }
   0xf   : > { %p187_p4 = por %p186_p1, %p185_p0  ;;  %p301_p7 = scmp.lt.s32.totalorder %s2911_s18, 3 }
  0x10   : > { %p3019_p6 = por %p3428_p3, %p191_p2  ;;  %s2913_s23 = smov [#allocation3]  }
  0x11   : > { %p3024_p8 = pnand %p2095_p5, %p301_p7  ;;  %s323_s24 = sshll.u32 %s2913_s23, 4  ;;  %s324_s24 = int_to_ptr.vmem [resolvable:$true] %s323_s24 }
  0x12   : > { %s3452_s21 = scalar_select %p3019_p6, 1, 0 }
  0x13   : > { %s3453_s22 = scalar_select %p3024_p8, 1, 0 }
  0x14   : > { %p2529_p9 = pneg %p3024_p8  ;;  %p2545_p10 = scmp.lt.s32.totalorder %s2911_s18, 2 }
  0x15   : > { %s32_s27 = sadd.s32 1, %s2907_s17  ;;  %s3456_s1 = sld [smem:[#allocation19_spill]] }
  0x16   : > { %p3033_p11 = pnand %p2529_p9, %p3428_p3  ;;  %p3037_p12 = pnand %p2545_p10, %p187_p4 }
  0x18   : > { %s3455_s26 = scalar_select %p3037_p12, 1, 0 }
  0x19   : > { %p3439_p0 = pneg %p3033_p11 }
  0x1b   : > { %s2707_s30 = scalar_lea.hbm %s3456_s1, 3072 }
  0x1c   : > { %p2708_p13 = scmp.ne.s32.totalorder %s3456_s1, %s2707_s30  ;;  %p2714_p4 = scmp.lt.u32.totalorder %s2707_s30, %s3456_s1 }
  0x1e   : > { %p2710_p1 = pnand %p3439_p0, %p2708_p13 }
  0x20   : > { %p2711_p2 = pneg %p2710_p1 }
  0x22   : > { %p2716_p5 = pnand %p2714_p4, %p2711_p2 }
  0x24   : > { %2719 = shalt.err (!%p2716_p5)
}
  0x25   : > { %s2720_s20 = scalar_lea.vmem %s324_s24, 3072  ;;  %p2728_p3 = scmp.lt.s32.totalorder %s324_s24, %s324_s24 }
  0x26   : > { %p2721_p7 = scmp.ne.s32.totalorder %s324_s24, %s2720_s20  ;;  %p2729_p6 = scmp.lt.s32.totalorder %s2720_s20, %s2720_s20 }
  0x28   : > { %p2723_p9 = pnand %p2721_p7, %p3439_p0  ;;  %p2730_p8 = por %p2729_p6, %p2728_p3 }
  0x2a   : > { %p2724_p10 = pneg %p2723_p9 }
  0x2c   : > { %p2731_p12 = pnand %p2730_p8, %p2724_p10 }
  0x2e   : > { %2734 = shalt.err (!%p2731_p12)
}
  0x2f   : > { %s3434_s28 = smov 64   ;;  %s3436_s29 = smov 4  }
  0x30   : > { %2532 = dma.hbm_to_vmem [thread:$0]  (!%p3033_p11), %s3456_s1, 3072, %s324_s24, [#allocation4], %s3434_s28, %s3434_s28, %s3436_s29  }
  0x31   : > { %p33_p3 = scmp.ge.s32.totalorder %s32_s27, 2  ;;  %s367_s20 = sand.u32 1, %s2911_s18  }
  0x32   : > { %s369_s12 = sand.u32 1, %s2899_s15   ;;  %s3438_s10 = sshll.u32 %s2907_s17, 10 }
  0x33   : > { %s3492_s27 = smov (%p33_p3, %s32_s27), 0  ;;  %s3071_s13 = sshll.u32 %s369_s12, 6 }
  0x34   : > { %3457 = sst [smem:[#allocation17_spill]] %s3492_s27  ;;  %s175_s23 = ssub.s32 %s2907_s17, %s3492_s27 }
  0x35   : > { %p176_p6 = scmp.eq.s32.totalorder %s175_s23, 0  ;;  %s3458_s6 = sld [smem:[#allocation21_spill]] }
  0x36   : > { %s371_s24 = scalar_lea.vmem [#allocation8], %s3071_s13  ;;  %s3459_s28 = sadd.s32 1, %s2899_s15 }
  0x37   : > { %s378_s11 = sshll.u32 %s371_s24, 4  ;;  %s3091_s12 = scalar_lea.sflag [#allocation4], %s367_s20  ;;  %s3089_s11 = int_to_ptr.vmem [resolvable:$true] %s378_s11 }
  0x38   : > { %s3087_s29 = scalar_select %p176_p6, %s2899_s15, %s3459_s28  }
  0x39   : > { %p3461_p12 = scmp.ne.s32.totalorder %s3455_s26, 0 }
  0x3a   : > { %3460 = sst [smem:[#allocation18_spill]] %s3087_s29 }
  0x3b   : > { %s3081_s30 = scalar_lea.hbm %s3458_s6, %s3438_s10  ;;  %p3443_p13 = pneg %p3461_p12 }
  0x3c   : > { %s2735_s23 = scalar_lea.hbm %s3081_s30, 1024  ;;  %s2740_s10 = scalar_lea.hbm %s3458_s6, 2048 }
  0x3d   : > { %p2736_p8 = scmp.ne.s32.totalorder %s3081_s30, %s2735_s23  ;;  %p2741_p4 = scmp.lt.u32.totalorder %s3081_s30, %s3458_s6 }
  0x3e   : > { %p2742_p5 = scmp.lt.u32.totalorder %s2740_s10, %s2735_s23  ;;  %p2744_p9 = scmp.lt.u32.totalorder %s2735_s23, %s3081_s30 }
  0x3f   : > { %p2738_p1 = pnand %p3443_p13, %p2736_p8 }
  0x40   : > { %p2743_p7 = por %p2742_p5, %p2741_p4 }
  0x41   : > { %p2739_p2 = pneg %p2738_p1 }
  0x42   : > { %p2745_p10 = por %p2744_p9, %p2743_p7 }
  0x44   : > { %p2746_p3 = pnand %p2745_p10, %p2739_p2 }
  0x46   : > { %2749 = shalt.err (!%p2746_p3)
}
  0x47   : > { %s2750_s28 = scalar_lea.vmem %s3089_s11, 1024  ;;  %s2916_s20 = smov [#allocation8]  }
  0x48   : > { %p2751_p6 = scmp.ne.s32.totalorder %s3089_s11, %s2750_s28  ;;  %s2755_s4 = sshll.u32 %s2916_s20, 4  ;;  %s2756_s4 = int_to_ptr.vmem [resolvable:$false] %s2755_s4 }
  0x49   : > { %s2757_s1 = scalar_lea.vmem %s2756_s4, 2048  ;;  %p2758_p0 = scmp.lt.s32.totalorder %s3089_s11, %s2756_s4 }
  0x4a   : > { %p2753_p8 = pnand %p2751_p6, %p3443_p13  ;;  %p2759_p4 = scmp.lt.s32.totalorder %s2757_s1, %s2750_s28 }
  0x4c   : > { %p2754_p1 = pneg %p2753_p8  ;;  %p2760_p5 = por %p2759_p4, %p2758_p0 }
  0x4e   : > { %p2761_p7 = pnand %p2760_p5, %p2754_p1 }
  0x50   : > { %2764 = shalt.err (!%p2761_p7)
}
  0x51   : > { %s3462_s10 = smov 4   ;;  %s3463_s23 = smov 64  }
  0x52   : > { %2539 = dma.hbm_to_vmem [thread:$0]  (!%p3461_p12), %s3081_s30, 1024, %s3089_s11, %s3091_s12, %s3463_s23, %s3463_s23, %s3462_s10  }
  0x53   : > { %s2917_s9 = smov [#allocation6]   ;;  %s3464_s20 = sshll.u32 %s2907_s17, 10 }
  0x54   : > { %s339_s24 = sshll.u32 %s2917_s9, 4  ;;  %s3127_s1 = scalar_lea.hbm %s3425_s8, %s3464_s20  ;;  %s340_s24 = int_to_ptr.vmem [resolvable:$true] %s339_s24 }
  0x55   : > { %s2765_s29 = scalar_lea.hbm %s3420_s3, 3072  ;;  %p3465_p2 = pneg %p3033_p11 }
  0x56   : > { %p2766_p0 = scmp.ne.s32.totalorder %s3420_s3, %s2765_s29  ;;  %p2772_p3 = scmp.lt.u32.totalorder %s2765_s29, %s3420_s3 }
  0x58   : > { %p2768_p9 = pnand %p2766_p0, %p3465_p2 }
  0x5a   : > { %p2769_p10 = pneg %p2768_p9 }
  0x5c   : > { %p2774_p6 = pnand %p2772_p3, %p2769_p10 }
  0x5e   : > { %2777 = shalt.err (!%p2774_p6)
}
  0x5f   : > { %s2778_s9 = scalar_lea.vmem %s340_s24, 3072  ;;  %p3466_p1 = pmov %p3465_p2 }
  0x60   : > { %p2779_p8 = scmp.ne.s32.totalorder %s340_s24, %s2778_s9  ;;  %p2786_p7 = scmp.lt.s32.totalorder %s340_s24, %s340_s24 }
  0x61   : > { %p2787_p13 = scmp.lt.s32.totalorder %s2778_s9, %s2778_s9 }
  0x62   : > { %p2781_p4 = pnand %p2779_p8, %p3466_p1 }
  0x63   : > { %p2788_p12 = por %p2787_p13, %p2786_p7 }
  0x64   : > { %p2782_p5 = pneg %p2781_p4 }
  0x66   : > { %p2789_p0 = pnand %p2788_p12, %p2782_p5 }
  0x68   : > { %2792 = shalt.err (!%p2789_p0)
}
  0x69   : > { %2535 = dma.hbm_to_vmem [thread:$0]  (!%p3033_p11), %s3420_s3, 3072, %s340_s24, [#allocation7], %s3463_s23, %s3463_s23, %s3462_s10  }
  0x6a   : > { %s398_s18 = scalar_lea.vmem [#allocation9], %s3071_s13  ;;  %s2793_s29 = scalar_lea.hbm %s3127_s1, 1024 }
  0x6b   : > { %s405_s27 = sshll.u32 %s398_s18, 4  ;;  %p2794_p12 = scmp.ne.s32.totalorder %s3127_s1, %s2793_s29  ;;  %s3153_s27 = int_to_ptr.vmem [resolvable:$true] %s405_s27 }
  0x6c   : > { %p3467_p13 = scmp.ne.s32.totalorder %s3455_s26, 0  ;;  %s2798_s4 = scalar_lea.hbm %s3425_s8, 2048 }
  0x6d   : > { %p2799_p3 = scmp.lt.u32.totalorder %s3127_s1, %s3425_s8  ;;  %p2800_p6 = scmp.lt.u32.totalorder %s2798_s4, %s2793_s29 }
  0x6e   : > { %p3468_p2 = pneg %p3467_p13  ;;  %p2802_p8 = scmp.lt.u32.totalorder %s2793_s29, %s3127_s1 }
  0x6f   : > { %p2801_p11 = por %p2800_p6, %p2799_p3 }
  0x70   : > { %p2796_p9 = pnand %p2794_p12, %p3468_p2 }
  0x71   : > { %p2803_p1 = por %p2802_p8, %p2801_p11 }
  0x72   : > { %p2797_p10 = pneg %p2796_p9 }
  0x74   : > { %p2804_p4 = pnand %p2803_p1, %p2797_p10 }
  0x76   : > { %2807 = shalt.err (!%p2804_p4)
}
  0x77   : > { %s2808_s13 = scalar_lea.vmem %s3153_s27, 1024  ;;  %p3469_p7 = pmov %p3468_p2 }
  0x78   : > { %p2809_p5 = scmp.ne.s32.totalorder %s3153_s27, %s2808_s13  ;;  %s2918_s24 = smov [#allocation9]  }
  0x79   : > { %s2813_s11 = sshll.u32 %s2918_s24, 4  ;;  %s2814_s11 = int_to_ptr.vmem [resolvable:$false] %s2813_s11 }
  0x7a   : > { %p2811_p0 = pnand %p2809_p5, %p3469_p7  ;;  %s2815_s9 = scalar_lea.vmem %s2814_s11, 2048 }
  0x7b   : > { %p2816_p2 = scmp.lt.s32.totalorder %s3153_s27, %s2814_s11  ;;  %p2817_p9 = scmp.lt.s32.totalorder %s2815_s9, %s2808_s13 }
  0x7c   : > { %p2812_p12 = pneg %p2811_p0 }
  0x7d   : > { %p2818_p3 = por %p2817_p9, %p2816_p2 }
  0x7f   : > { %p2819_p6 = pnand %p2818_p3, %p2812_p12 }
  0x81   : > { %2822 = shalt.err (!%p2819_p6)
}
  0x82   : > { %2542 = dma.hbm_to_vmem [thread:$0]  (!%p3467_p13), %s3127_s1, 1024, %s3153_s27, %s3091_s12, %s3463_s23, %s3463_s23, %s3462_s10  }
  0x83   : > { %p3470_p10 = scmp.ne.s32.totalorder %s3453_s22, 0 }
  0x84   : > { %p3471_p11 = scmp.eq.s32.totalorder (!%p3470_p10), %s3008_s19, 0 }
  0x85   : > { %417 = sbr.rel (%p3470_p10) target bundleno = 1862 (0x746), region = 60 }
  0x8c   : > { %2874 = dma.done.wait (%p3471_p11), [#allocation4], 3072   ;;  %p3472_p8 = pmov %p3471_p11 }
  0x8e   : > { %2876 = vsyncadd (%p3472_p8), [#allocation4], 4294964224  ;;  %p3473_p1 = pmov %p3472_p8 }
  0x90   : > { %2878 = dma.done.wait (%p3473_p1), [#allocation7], 3072   ;;  %p3474_p4 = pmov %p3473_p1 }
  0x91   : > { %s427_s26 = sand.u32 1, %s3008_s19   ;;  %s429_s12 = sand.u32 1, %s2895_s14  }
  0x92   : > { %2880 = vsyncadd (%p3474_p4), [#allocation7], 4294964224  ;;  %s2109_s10 = sshll.u32 %s429_s12, 6  ;;  %s428_s22 = scalar_lea.sflag [#allocation4], %s427_s26 }
  0x93   : > { %s3194_s23 = scalar_lea.vmem [#allocation8], %s2109_s10  ;;  %p3475_p13 = scmp.ne.s32.totalorder %s3452_s21, 0 }
  0x95   : > { %2882 = dma.done.wait (%p3475_p13), %s428_s22, 2048  }
  0x96   : > { %2884 = vsyncadd (%p3475_p13), %s428_s22, 4294965248  ;;  %p498_p5 = scmp.lt.s32.totalorder %s2903_s16, 1  ;;  %s3214_s4 = scalar_lea.vmem [#allocation9], %s2109_s10 }
  0x97   : > { %p2113_p7 = scmp.ne.s32.totalorder %s2903_s16, 0 }
  0x98   : > { %s3202_s1 = scalar_select %p498_p5, %s2903_s16, 1 }
  0x99   : > { %511 = sbr.rel (%p2113_p7) target bundleno = 777 (0x309), region = 80  ;;  %v2607_v0 = vld [vmem:[#allocation3 + $0x40] sm:$0xff] (!%p2113_p7)   ;;  %v2919_v1 = vmov (!%p2113_p7), 0.0   ;;  %v2608_v2 = vld [vmem:[#allocation3 + $0x48] sm:$0xff] (!%p2113_p7)   ;;  %v2609_v3 = vld [vmem:[#allocation3 + $0x50] sm:$0xff] (!%p2113_p7)   ;;  %vm529_vm0 = vcmask (!%p2113_p7), 1040384  }
  0x9a   : > { %s2226_s6 = sshll.u32 %s3202_s1, 4  ;;  %s505_s27 = scalar_lea.vmem %s3424_s7, %s3202_s1  ;;  %512 = vst [vmem:[#allocation2 + $0x2] sm:$0x3f] (!%p2113_p7), %v2919_v1  ;;  %513 = vst [vmem:[#allocation2 + $0x22] sm:$0x3f] (!%p2113_p7), %v2919_v1  ;;  %2317 = vmatprep.subr.bf16.mxu0 (!%p2113_p7), %v2607_v0  ;;  %v2610_v4 = vld [vmem:[#allocation3 + $0x58] sm:$0xff] (!%p2113_p7)  }
  0x9b   : > { %s3212_s20 = scalar_lea.vmem %s3422_s5, %s2226_s6  ;;  %514 = vst [vmem:[#allocation2 + $0x18] sm:$0x3f] (!%p2113_p7), %v2919_v1  ;;  %515 = vst [vmem:[#allocation2 + $0x38] sm:$0x3f] (!%p2113_p7), %v2919_v1  ;;  %2318 = vmatpush3.bf16.msra.mxu0 (!%p2113_p7), %v2607_v0  ;;  %v516_v5 = vld [vmem:[%s3417_s0] sm:$0xff] (!%p2113_p7)   ;;  %v2612_v7 = vld [vmem:[#allocation3 + $0x68] sm:$0xff] (!%p2113_p7)  }
  0x9c   : > { %2319 = vmatprep.subr.bf16.mxu0 (!%p2113_p7), %v2608_v2  ;;  %2333 = vmatprep.mubr.bf16.mxu0 (!%p2113_p7), %v516_v5  ;;  %v2611_v6 = vld [vmem:[#allocation3 + $0x60] sm:$0xff] (!%p2113_p7)   ;;  %v2613_v8 = vld [vmem:[#allocation3 + $0x70] sm:$0xff] (!%p2113_p7)   ;;  %v520_v9 = vunpack.c.l.bf16 (!%p2113_p7), %v516_v5  ;;  %v521_v10 = vunpack.c.h.bf16 (!%p2113_p7), %v516_v5  ;;  %v2614_v11 = vld [vmem:[#allocation3 + $0x78] sm:$0xff] (!%p2113_p7)   ;;  %vm2920_vm2 = vmmov (!%p2113_p7), 1   ;;  %vm542_vm4 = vcmask (!%p2113_p7), 1046528   ;;  %s3480_s12 = sld [smem:[#allocation20_spill]] (!%p2113_p7) }
  0x9d   : > { %vm2132_vm1 = vmneg (!%p2113_p7), %vm529_vm0  ;;  %v3224_v14 = vld [vmem:[%s3417_s0 + $0x8] sm:$0xff] (!%p2113_p7)   ;;  %v2616_v15 = vld [vmem:[#allocation3] sm:$0xff] (!%p2113_p7)  }
  0x9e   : > { %v530_v12 = vrot.slane (!%p2113_p7), %v520_v9, 7  ;;  %v531_v13 = vrot.slane (!%p2113_p7), %v521_v10, 7  ;;  %vm3227_vm3 = vmpackc.low (!%p2113_p7), %vm2920_vm2, %vm2132_vm1  ;;  %v2618_v18 = vld [vmem:[#allocation3 + $0x8] sm:$0xff] (!%p2113_p7)   ;;  %v2619_v20 = vld [vmem:[#allocation3 + $0x10] sm:$0xff] (!%p2113_p7)   ;;  %v522_v24 = vunpack.c.l.bf16 (!%p2113_p7), %v3224_v14  ;;  %v523_v25 = vunpack.c.h.bf16 (!%p2113_p7), %v3224_v14 }
  0x9f   : > { %2320 = vmatpush3.bf16.msra.mxu0 (!%p2113_p7), %v2608_v2  ;;  %v2620_v21 = vld [vmem:[#allocation3 + $0x18] sm:$0xff] (!%p2113_p7)   ;;  %v2621_v22 = vld [vmem:[#allocation3 + $0x20] sm:$0xff] (!%p2113_p7)   ;;  %v2622_v23 = vld [vmem:[#allocation3 + $0x28] sm:$0xff] (!%p2113_p7)   ;;  %v543_v29 = vrot.slane (!%p2113_p7), %v520_v9, 1  ;;  %v544_v30 = vrot.slane (!%p2113_p7), %v521_v10, 1 }
  0xa0   : > { %2321 = vmatprep.subr.bf16.mxu0 %v2609_v3  ;;  %v532_v17 = vsel %vm529_vm0, %v530_v12, %v531_v13  ;;  %v2623_v26 = vld [vmem:[#allocation3 + $0x30] sm:$0xff]   ;;  %v533_v27 = vrot.slane %v522_v24, 7  ;;  %v534_v28 = vrot.slane %v523_v25, 7  ;;  %v2624_v31 = vld [vmem:[#allocation3 + $0x38] sm:$0xff]   ;;  %v2625_v34 = vld [vmem:[#allocation3 + $0x80] sm:$0xff]   ;;  %v546_v44 = vrot.slane %v522_v24, 1 }
  0xa1   : > { %v2134_v19 = vpack.c.bf16 %v532_v17, %v530_v12  ;;  %v545_v33 = vsel %vm542_vm4, %v543_v29, %v544_v30  ;;  %v2626_v37 = vld [vmem:[#allocation3 + $0x88] sm:$0xff]   ;;  %vm3241_vm5 = vmpackc.low %vm542_vm4, %vm2920_vm2  ;;  %v2627_v39 = vld [vmem:[#allocation3 + $0x90] sm:$0xff]   ;;  %v547_v45 = vrot.slane %v523_v25, 1 }
  0xa2   : > { %v535_v32 = vsel %vm529_vm0, %v533_v27, %v534_v28  ;;  %v2149_v36 = vpack.c.bf16 %v544_v30, %v545_v33  ;;  %v2628_v40 = vld [vmem:[#allocation3 + $0x98] sm:$0xff]   ;;  %v2629_v41 = vld [vmem:[#allocation3 + $0xa0] sm:$0xff]   ;;  %v2630_v42 = vld [vmem:[#allocation3 + $0xa8] sm:$0xff]  }
  0xa3   : > { %2322 = vmatpush3.bf16.msra.mxu0 %v2609_v3  ;;  %v2138_v35 = vpack.c.bf16 %v535_v32, %v533_v27  ;;  %v2631_v43 = vld [vmem:[#allocation3 + $0xb0] sm:$0xff]   ;;  %v2632_v46 = vld [vmem:[#allocation3 + $0xb8] sm:$0xff]   ;;  %v548_v47 = vsel %vm542_vm4, %v546_v44, %v547_v45  ;;  %v2633_v49 = vld [vmem:[#allocation6 + $0x40] sm:$0xff]  }
  0xa4   : > { %2323 = vmatprep.subr.bf16.mxu0 %v2610_v4  ;;  %v2152_v48 = vpack.c.bf16 %v547_v45, %v548_v47  ;;  %2377 = vmatprep.subr.bf16.mxu1 %v2633_v49  ;;  %v2634_v50 = vld [vmem:[#allocation6 + $0x48] sm:$0xff]   ;;  %v2635_v51 = vld [vmem:[#allocation6 + $0x50] sm:$0xff]   ;;  %v2636_v52 = vld [vmem:[#allocation6 + $0x58] sm:$0xff]  }
  0xa5   : > { %2378 = vmatpush3.bf16.msra.mxu1 %v2633_v49  ;;  %v2637_v53 = vld [vmem:[#allocation6 + $0x60] sm:$0xff]   ;;  %v2638_v54 = vld [vmem:[#allocation6 + $0x68] sm:$0xff]   ;;  %v2639_v55 = vld [vmem:[#allocation6 + $0x70] sm:$0xff]  }
  0xa6   : > { %2379 = vmatprep.subr.bf16.mxu1 %v2634_v50  ;;  %v2640_v56 = vld [vmem:[#allocation6 + $0x78] sm:$0xff]   ;;  %v3252_v57 = vld [vmem:[#allocation6] sm:$0xff]  }
  0xa7   : > { %2324 = vmatpush3.bf16.msra.mxu0 %v2610_v4  ;;  %v2154_v58 = vld [vmem:[%s3419_s2] ss:$0 sm:$0xff]  ;;  %v2656_v16 = vld [vmem:[#allocation6 + $0xb8] sm:$0xff]  }
  0xa8   : > { %2325 = vmatprep.subr.bf16.mxu0 %v2611_v6 }
  0xa9   : > { %2380 = vmatpush3.bf16.msra.mxu1 %v2634_v50 }
  0xaa   : > { %2381 = vmatprep.subr.bf16.mxu1 %v2635_v51 }
  0xab   : > { %2326 = vmatpush3.bf16.msra.mxu0 %v2611_v6 }
  0xac   : > { %2327 = vmatprep.subr.bf16.mxu0 %v2612_v7 }
  0xad   : > { %2382 = vmatpush3.bf16.msra.mxu1 %v2635_v51  ;;  %v2642_v51 = vld [vmem:[#allocation6 + $0x8] sm:$0xff]  }
  0xae   : > { %2383 = vmatprep.subr.bf16.mxu1 %v2636_v52 }
  0xaf   : > { %2328 = vmatpush3.bf16.msra.mxu0 %v2612_v7 }
  0xb0   : > { %2329 = vmatprep.subr.bf16.mxu0 %v2613_v8 }
  0xb1   : > { %2384 = vmatpush3.bf16.msra.mxu1 %v2636_v52 }
  0xb2   : > { %2385 = vmatprep.subr.bf16.mxu1 %v2637_v53 }
  0xb3   : > { %2330 = vmatpush3.bf16.msra.mxu0 %v2613_v8 }
  0xb4   : > { %2331 = vmatprep.subr.bf16.mxu0 %v2614_v11 }
  0xb5   : > { %2386 = vmatpush3.bf16.msra.mxu1 %v2637_v53 }
  0xb6   : > { %2387 = vmatprep.subr.bf16.mxu1 %v2638_v54 }
  0xb7   : > { %2332 = vmatpush3.bf16.msra.mxu0 %v2614_v11 }
  0xb8   : > { %2337 = vmatprep.subr.bf16.mxu0 %v2616_v15 }
  0xb9   : > { %2388 = vmatpush3.bf16.msra.mxu1 %v2638_v54 }
  0xba   : > { %2334 = vmatmul.mubr.bf16.vlgmr.msra.gmra.mrb[0].mxu0 %v3224_v14  ;;  %2389 = vmatprep.subr.bf16.mxu1 %v2639_v55 }
  0xbb   : > { %2338 = vmatpush3.bf16.msra.mxu0 %v2616_v15  ;;  %2353 = vmatprep.mubr.msk.bf16.mxu0 %vm3227_vm3, %v2134_v19 }
  0xbc   : > { %2339 = vmatprep.subr.bf16.mxu0 %v2618_v18 }
  0xbd   : > { %2390 = vmatpush3.bf16.msra.mxu1 %v2639_v55 }
  0xbe   : > { %2391 = vmatprep.subr.bf16.mxu1 %v2640_v56 }
  0xbf   : > { %2340 = vmatpush3.bf16.msra.mxu0 %v2618_v18 }
  0xc0   : > { %2341 = vmatprep.subr.bf16.mxu0 %v2619_v20 }
  0xc1   : > { %2392 = vmatpush3.bf16.msra.mxu1 %v2640_v56 }
  0xc2   : > { %2397 = vmatprep.subr.bf16.mxu1 %v3252_v57 }
  0xc3   : > { %2342 = vmatpush3.bf16.msra.mxu0 %v2619_v20 }
  0xc4   : > { %2343 = vmatprep.subr.bf16.mxu0 %v2620_v21 }
  0xc7   : > { %2344 = vmatpush3.bf16.msra.mxu0 %v2620_v21 }
  0xc8   : > { %2345 = vmatprep.subr.bf16.mxu0 %v2621_v22 }
  0xcb   : > { %2346 = vmatpush3.bf16.msra.mxu0 %v2621_v22 }
  0xcc   : > { %2347 = vmatprep.subr.bf16.mxu0 %v2622_v23 }
  0xcf   : > { %2348 = vmatpush3.bf16.msra.mxu0 %v2622_v23 }
  0xd0   : > { %2349 = vmatprep.subr.bf16.mxu0 %v2623_v26 }
  0xd3   : > { %2350 = vmatpush3.bf16.msra.mxu0 %v2623_v26 }
  0xd4   : > { %2351 = vmatprep.subr.bf16.mxu0 %v2624_v31 }
  0xd7   : > { %2352 = vmatpush3.bf16.msra.mxu0 %v2624_v31 }
  0xd8   : > { %2357 = vmatprep.subr.bf16.mxu0 %v2625_v34 }
  0xda   : > { %2354 = vmatmul.mubr.msk.bf16.vlgmr.msra.gmra.mrb[0].mxu0 %vm3227_vm3, %v2138_v35 }
  0xdb   : > { %2358 = vmatpush3.bf16.msra.mxu0 %v2625_v34  ;;  %2373 = vmatprep.mubr.msk.bf16.mxu0 %vm3241_vm5, %v2149_v36 }
  0xdc   : > { %2359 = vmatprep.subr.bf16.mxu0 %v2626_v37 }
  0xdf   : > { %2360 = vmatpush3.bf16.msra.mxu0 %v2626_v37 }
  0xe0   : > { %2361 = vmatprep.subr.bf16.mxu0 %v2627_v39 }
  0xe3   : > { %2362 = vmatpush3.bf16.msra.mxu0 %v2627_v39 }
  0xe4   : > { %2363 = vmatprep.subr.bf16.mxu0 %v2628_v40 }
  0xe7   : > { %2364 = vmatpush3.bf16.msra.mxu0 %v2628_v40 }
  0xe8   : > { %2365 = vmatprep.subr.bf16.mxu0 %v2629_v41 }
  0xeb   : > { %2366 = vmatpush3.bf16.msra.mxu0 %v2629_v41 }
  0xec   : > { %2367 = vmatprep.subr.bf16.mxu0 %v2630_v42 }
  0xef   : > { %2368 = vmatpush3.bf16.msra.mxu0 %v2630_v42 }
  0xf0   : > { %2369 = vmatprep.subr.bf16.mxu0 %v2631_v43 }
  0xf3   : > { %2370 = vmatpush3.bf16.msra.mxu0 %v2631_v43 }
  0xf4   : > { %2371 = vmatprep.subr.bf16.mxu0 %v2632_v46 }
  0xf7   : > { %2372 = vmatpush3.bf16.msra.mxu0 %v2632_v46 }
  0xfa   : > { %2374 = vmatmul.mubr.msk.bf16.vlgmr.msra.gmra.mrb[0].mxu0 %vm3241_vm5, %v2152_v48 }
 0x1cd   : > { %v2375_v59 = vpop.f32.mrb[0].mxu0 }
 0x1ce   : > { %v914_v60 = vadd.f32 %v2375_v59, %v2154_v58  ;;  %v887_v61 = vpop.f32.mrb[1].mxu0 }
 0x1cf   : > { %v912_v62 = vadd.f32 %v2154_v58, %v887_v61  ;;  %v2376_v63 = vpop.f32.mrb[2].mxu0  ;;  %v2643_v61 = vld [vmem:[#allocation6 + $0x10] sm:$0xff]  }
 0x1d0   : > { %v922_v0 = vmul.f32 0.044715, %v914_v60  ;;  %v915_v1 = vadd.f32 %v2376_v63, %v2154_v58  ;;  %v890_v2 = vpop.f32.mrb[3].mxu0  ;;  %v918_v26 = vmul.f32 0.5, %v914_v60  ;;  %v2645_v63 = vld [vmem:[#allocation6 + $0x20] sm:$0xff]  }
 0x1d1   : > { %v920_v3 = vmul.f32 0.044715, %v912_v62  ;;  %v913_v4 = vadd.f32 %v2154_v58, %v890_v2  ;;  %v916_v29 = vmul.f32 0.5, %v912_v62  ;;  %v2649_v2 = vld [vmem:[#allocation6 + $0x80] sm:$0xff]  }
 0x1d2   : > { %v926_v5 = vmul.f32 %v922_v0, %v914_v60  ;;  %v923_v6 = vmul.f32 0.044715, %v915_v1  ;;  %v919_v32 = vmul.f32 0.5, %v915_v1  ;;  %v2646_v0 = vld [vmem:[#allocation6 + $0x28] sm:$0xff]  }
 0x1d3   : > { %v924_v7 = vmul.f32 %v920_v3, %v912_v62  ;;  %v921_v8 = vmul.f32 0.044715, %v913_v4  ;;  %v917_v35 = vmul.f32 0.5, %v913_v4  ;;  %v2650_v3 = vld [vmem:[#allocation6 + $0x88] sm:$0xff]  }
 0x1d4   : > { %v930_v9 = vmul.f32 %v926_v5, %v914_v60  ;;  %v927_v10 = vmul.f32 %v923_v6, %v915_v1  ;;  %v2652_v5 = vld [vmem:[#allocation6 + $0x98] sm:$0xff]   ;;  %v2653_v6 = vld [vmem:[#allocation6 + $0xa0] sm:$0xff]  }
 0x1d5   : > { %v925_v11 = vmul.f32 %v921_v8, %v913_v4  ;;  %v928_v12 = vmul.f32 %v924_v7, %v912_v62  ;;  %v2654_v7 = vld [vmem:[#allocation6 + $0xa8] sm:$0xff]   ;;  %v2655_v8 = vld [vmem:[#allocation6 + $0xb0] sm:$0xff]  }
 0x1d6   : > { %v934_v13 = vadd.f32 %v930_v9, %v914_v60  ;;  %v931_v14 = vmul.f32 %v927_v10, %v915_v1  ;;  %v2193_v9 = vld [vmem:[%s3480_s12] ss:$0 sm:$0xff] }
 0x1d7   : > { %v929_v15 = vmul.f32 %v925_v11, %v913_v4  ;;  %v932_v17 = vadd.f32 %v928_v12, %v912_v62  ;;  %v2644_v62 = vld [vmem:[#allocation6 + $0x18] sm:$0xff]  }
 0x1d8   : > { %v938_v18 = vmul.f32 0.7978846, %v934_v13  ;;  %v935_v19 = vadd.f32 %v931_v14, %v915_v1  ;;  %v2647_v1 = vld [vmem:[#allocation6 + $0x30] sm:$0xff]  }
 0x1d9   : > { %v933_v20 = vadd.f32 %v929_v15, %v913_v4  ;;  %v936_v21 = vmul.f32 0.7978846, %v932_v17  ;;  %v2651_v4 = vld [vmem:[#allocation6 + $0x90] sm:$0xff]  }
 0x1da   : > { %v939_v22 = vmul.f32 0.7978846, %v935_v19  ;;  %2659 = vtanh.f32 %v938_v18 }
 0x1db   : > { %v937_v23 = vmul.f32 0.7978846, %v933_v20  ;;  %2661 = vtanh.f32 %v936_v21 }
 0x1dc   : > { %2663 = vtanh.f32 %v939_v22 }
 0x1dd   : > { %2665 = vtanh.f32 %v937_v23 }
 0x1e4   : > { %v2660_v24 = vpop.eup %2659 }
 0x1e5   : > { %v2662_v25 = vpop.eup %2661  ;;  %v946_v27 = vadd.f32 1.0, %v2660_v24 }
 0x1e6   : > { %v2664_v28 = vpop.eup %2663  ;;  %v944_v30 = vadd.f32 1.0, %v2662_v25 }
 0x1e7   : > { %v2666_v31 = vpop.eup %2665  ;;  %v947_v33 = vadd.f32 1.0, %v2664_v28  ;;  %v950_v34 = vmul.f32 %v946_v27, %v918_v26 }
 0x1e8   : > { %v945_v36 = vadd.f32 1.0, %v2666_v31  ;;  %v948_v37 = vmul.f32 %v944_v30, %v916_v29 }
 0x1e9   : > { %v951_v39 = vmul.f32 %v947_v33, %v919_v32  ;;  %v960_v41 = vrot.slane %v950_v34, 7  ;;  %v972_v42 = vrot.slane %v950_v34, 1 }
 0x1ea   : > { %v949_v40 = vmul.f32 %v945_v36, %v917_v35  ;;  %v957_v43 = vrot.slane %v948_v37, 7  ;;  %v969_v48 = vrot.slane %v948_v37, 1 }
 0x1eb   : > { %v961_v44 = vrot.slane %v951_v39, 7  ;;  %v973_v45 = vrot.slane %v951_v39, 1  ;;  %v1017_v46 = vpack.c.bf16 %v951_v39, %v950_v34 }
 0x1ec   : > { %v958_v47 = vrot.slane %v949_v40, 7  ;;  %v970_v49 = vrot.slane %v949_v40, 1  ;;  %v1016_v50 = vpack.c.bf16 %v949_v40, %v948_v37 }
 0x1ed   : > { %v962_v52 = vsel %vm529_vm0, %v960_v41, %v961_v44  ;;  %v974_v53 = vsel %vm542_vm4, %v972_v42, %v973_v45 }
 0x1ee   : > { %2393 = vmatprep.mubr.bf16.mxu1 %v1016_v50  ;;  %v959_v54 = vsel %vm529_vm0, %v957_v43, %v958_v47  ;;  %v2177_v55 = vpack.c.bf16 %v962_v52, %v960_v41  ;;  %v971_v56 = vsel %vm542_vm4, %v969_v48, %v970_v49  ;;  %v2191_v58 = vpack.c.bf16 %v973_v45, %v974_v53 }
 0x1ef   : > { %2394 = vmatmul.mubr.bf16.vlgmr.msra.gmra.mrb[0].mxu1 %v1017_v46  ;;  %v2173_v59 = vpack.c.bf16 %v959_v54, %v957_v43  ;;  %v2188_v60 = vpack.c.bf16 %v970_v49, %v971_v56 }
 0x1f0   : > { %2398 = vmatpush3.bf16.msra.mxu1 %v3252_v57  ;;  %v2648_v57 = vld [vmem:[#allocation6 + $0x38] sm:$0xff]  }
 0x1f1   : > { %2413 = vmatprep.mubr.msk.bf16.mxu1 %vm3227_vm3, %v2173_v59  ;;  %2399 = vmatprep.subr.bf16.mxu1 %v2642_v51 }
 0x1f4   : > { %2400 = vmatpush3.bf16.msra.mxu1 %v2642_v51 }
 0x1f5   : > { %2401 = vmatprep.subr.bf16.mxu1 %v2643_v61 }
 0x1f8   : > { %2402 = vmatpush3.bf16.msra.mxu1 %v2643_v61 }
 0x1f9   : > { %2403 = vmatprep.subr.bf16.mxu1 %v2644_v62 }
 0x1fc   : > { %2404 = vmatpush3.bf16.msra.mxu1 %v2644_v62 }
 0x1fd   : > { %2405 = vmatprep.subr.bf16.mxu1 %v2645_v63 }
 0x200   : > { %2406 = vmatpush3.bf16.msra.mxu1 %v2645_v63 }
 0x201   : > { %2407 = vmatprep.subr.bf16.mxu1 %v2646_v0 }
 0x204   : > { %2408 = vmatpush3.bf16.msra.mxu1 %v2646_v0 }
 0x205   : > { %2409 = vmatprep.subr.bf16.mxu1 %v2647_v1 }
 0x208   : > { %2410 = vmatpush3.bf16.msra.mxu1 %v2647_v1 }
 0x209   : > { %2411 = vmatprep.subr.bf16.mxu1 %v2648_v57 }
 0x20c   : > { %2412 = vmatpush3.bf16.msra.mxu1 %v2648_v57 }
 0x20d   : > { %2417 = vmatprep.subr.bf16.mxu1 %v2649_v2 }
 0x20f   : > { %2414 = vmatmul.mubr.msk.bf16.vlgmr.msra.gmra.mrb[0].mxu1 %vm3227_vm3, %v2177_v55 }
 0x210   : > { %2418 = vmatpush3.bf16.msra.mxu1 %v2649_v2  ;;  %2433 = vmatprep.mubr.msk.bf16.mxu1 %vm3241_vm5, %v2188_v60 }
 0x211   : > { %2419 = vmatprep.subr.bf16.mxu1 %v2650_v3 }
 0x214   : > { %2420 = vmatpush3.bf16.msra.mxu1 %v2650_v3 }
 0x215   : > { %2421 = vmatprep.subr.bf16.mxu1 %v2651_v4 }
 0x218   : > { %2422 = vmatpush3.bf16.msra.mxu1 %v2651_v4 }
 0x219   : > { %2423 = vmatprep.subr.bf16.mxu1 %v2652_v5 }
 0x21c   : > { %2424 = vmatpush3.bf16.msra.mxu1 %v2652_v5 }
 0x21d   : > { %2425 = vmatprep.subr.bf16.mxu1 %v2653_v6 }
 0x220   : > { %2426 = vmatpush3.bf16.msra.mxu1 %v2653_v6 }
 0x221   : > { %2427 = vmatprep.subr.bf16.mxu1 %v2654_v7 }
 0x224   : > { %2428 = vmatpush3.bf16.msra.mxu1 %v2654_v7 }
 0x225   : > { %2429 = vmatprep.subr.bf16.mxu1 %v2655_v8 }
 0x228   : > { %2430 = vmatpush3.bf16.msra.mxu1 %v2655_v8 }
 0x229   : > { %2431 = vmatprep.subr.bf16.mxu1 %v2656_v16 }
 0x22c   : > { %2432 = vmatpush3.bf16.msra.mxu1 %v2656_v16 }
 0x22f   : > { %2434 = vmatmul.mubr.msk.bf16.vlgmr.msra.gmra.mrb[0].mxu1 %vm3241_vm5, %v2191_v58 }
 0x302   : > { %v2435_v10 = vpop.f32.mrb[0].mxu1 }
 0x303   : > { %v1340_v11 = vadd.f32 %v2435_v10, %v2193_v9  ;;  %v1313_v12 = vpop.f32.mrb[1].mxu1 }
 0x304   : > { %v1338_v13 = vadd.f32 %v2193_v9, %v1313_v12  ;;  %v2436_v14 = vpop.f32.mrb[2].mxu1 }
 0x305   : > { %1344 = vst [vmem:[#allocation2 + $0x28] sm:$0xff] %v1340_v11  ;;  %v1341_v15 = vadd.f32 %v2436_v14, %v2193_v9  ;;  %v1316_v17 = vpop.f32.mrb[3].mxu1 }
 0x306   : > { %1342 = vst [vmem:[#allocation2 + $0x8] sm:$0xff] %v1338_v13  ;;  %v1339_v18 = vadd.f32 %v2193_v9, %v1316_v17 }
 0x307   : > { %1345 = vst [vmem:[#allocation2 + $0x30] sm:$0xff] %v1341_v15 }
 0x308   : > { %1343 = vst [vmem:[#allocation2 + $0x10] sm:$0xff] %v1339_v18 }
 0x309 PF: > { %v1352_v19 = vlaneseq  ;;  %v1346_v20 = vld [vmem:[%s3212_s20] sm:$0xff]  ;;  %p2211_p0 = scmp.ne.s32.totalorder %s2903_s16, 1 }
 0x30a   : > { %s3481_s6 = sld [smem:[#allocation22_spill]] (!%p2211_p0) }
 0x30b   : > { %v3275_v38 = vshrl.u32 %v1352_v19, 7 }
 0x30c   : > { %v1350_v29 = vld [vmem:[#allocation2 + $0x22] sm:$0xff] }
 0x30d   : > { %v1354_v21 = vsub.s32 0, %v3275_v38  ;;  %v1362_v22 = vsub.s32 7, %v3275_v38  ;;  %v1374_v23 = vsub.s32 1, %v3275_v38  ;;  %v1390_v24 = vsub.s32 2, %v3275_v38  ;;  %v1348_v25 = vld [vmem:[#allocation2 + $0x2] sm:$0xff] }
 0x30e   : > { %v1368_v26 = vld [vmem:[#allocation2 + $0x4] sm:$0xff]  ;;  %v1406_v27 = vsub.s32 3, %v3275_v38  ;;  %v1420_v28 = vsub.s32 4, %v3275_v38  ;;  %v1434_v40 = vsub.s32 5, %v3275_v38  ;;  %v1450_v45 = vsub.s32 6, %v3275_v38  ;;  %v1371_v54 = vld [vmem:[#allocation2 + $0x2c] sm:$0xff] }
 0x30f   : > { %v1355_v30 = vrot.slane %v1346_v20, %v1354_v21  ;;  %v1363_v31 = vrot.slane %v1346_v20, %v1362_v22  ;;  %v1375_v32 = vrot.slane %v1346_v20, %v1374_v23  ;;  %v1384_v33 = vld [vmem:[#allocation2 + $0x6] sm:$0xff]  ;;  %v1391_v34 = vrot.slane %v1346_v20, %v1390_v24  ;;  %v1444_v50 = vld [vmem:[#allocation2 + $0xe] sm:$0xff] }
 0x310   : > { %v1349_v35 = vld [vmem:[#allocation2 + $0xa] sm:$0xff]  ;;  %v1407_v39 = vrot.slane %v1346_v20, %v1406_v27  ;;  %v1421_v49 = vrot.slane %v1346_v20, %v1420_v28  ;;  %v1435_v59 = vrot.slane %v1346_v20, %v1434_v40  ;;  %v1451_v3 = vrot.slane %v1346_v20, %v1450_v45  ;;  %v1416_v5 = vld [vmem:[#allocation2 + $0x12] sm:$0xff] }
 0x311   : > { %v1369_v36 = vld [vmem:[#allocation2 + $0xc] sm:$0xff]  ;;  %v1370_v41 = vld [vmem:[#allocation2 + $0x24] sm:$0xff]  ;;  %v1356_v43 = vmul.f32 %v1355_v30, %v1348_v25  ;;  %v1376_v44 = vmul.f32 %v1375_v32, %v1368_v26  ;;  %v1358_v46 = vmul.f32 %v1355_v30, %v1350_v29  ;;  %v1392_v48 = vmul.f32 %v1391_v34, %v1384_v33  ;;  %v1430_v12 = vld [vmem:[#allocation2 + $0x14] sm:$0xff] }
 0x312   : > { %v3290_v37 = vld [vmem:[#allocation2 + $0x8] sm:$0xff]  ;;  %v1378_v55 = vmul.f32 %v1375_v32, %v1370_v41  ;;  %v3300_v61 = vld [vmem:[#allocation2 + $0x10] sm:$0xff]  ;;  %v1357_v1 = vmul.f32 %v1355_v30, %v1349_v35  ;;  %v1377_v57 = vmul.f32 %v1375_v32, %v1369_v36  ;;  %v1422_v2 = vmul.f32 %v1421_v49, %v1349_v35 }
 0x313   : > { %v1386_v42 = vld [vmem:[#allocation2 + $0x26] sm:$0xff]  ;;  %v1364_v51 = vadd.f32 %v1363_v31, %v1356_v43  ;;  %v1366_v53 = vadd.f32 %v1363_v31, %v1358_v46  ;;  %v1408_v58 = vmul.f32 %v1407_v39, %v3290_v37  ;;  %v1446_v0 = vld [vmem:[#allocation2 + $0x2e] sm:$0xff]  ;;  %v1393_v16 = vmul.f32 %v1444_v50, %v1391_v34 }
 0x314   : > { %v3296_v47 = vld [vmem:[#allocation2 + $0x28] sm:$0xff]  ;;  %v1394_v56 = vmul.f32 %v1391_v34, %v1386_v42  ;;  %v1365_v8 = vadd.f32 %v1363_v31, %v1357_v1  ;;  %v3302_v9 = vld [vmem:[#allocation2 + $0x30] sm:$0xff]  ;;  %v1436_v10 = vmul.f32 %v1435_v59, %v1369_v36  ;;  %v1438_v11 = vmul.f32 %v1435_v59, %v1371_v54 }
 0x315   : > { %v1351_v52 = vld [vmem:[#allocation2 + $0x2a] sm:$0xff]  ;;  %v1410_v60 = vmul.f32 %v1407_v39, %v3296_v47  ;;  %v1380_v62 = vadd.f32 %v1376_v44, %v1364_v51  ;;  %v1382_v63 = vadd.f32 %v1378_v55, %v1366_v53  ;;  %v1379_v14 = vmul.f32 %v1375_v32, %v1371_v54  ;;  %v1417_v25 = vld [vmem:[#allocation2 + $0x32] sm:$0xff] }
 0x316   : > { %v1424_v4 = vmul.f32 %v1421_v49, %v1351_v52  ;;  %v1359_v13 = vmul.f32 %v1355_v30, %v1351_v52  ;;  %v1381_v18 = vadd.f32 %v1377_v57, %v1365_v8  ;;  %v1409_v22 = vmul.f32 %v1407_v39, %v3300_v61  ;;  %v1445_v42 = vld [vmem:[#allocation2 + $0x16] sm:$0xff] }
 0x317   : > { %v1396_v6 = vadd.f32 %v1392_v48, %v1380_v62  ;;  %v1398_v7 = vadd.f32 %v1394_v56, %v1382_v63  ;;  %v1452_v20 = vmul.f32 %v1451_v3, %v1444_v50  ;;  %v1454_v26 = vmul.f32 %v1451_v3, %v1446_v0  ;;  %v1431_v46 = vld [vmem:[#allocation2 + $0x34] sm:$0xff] }
 0x318   : > { %v1367_v28 = vadd.f32 %v1363_v31, %v1359_v13  ;;  %v1395_v29 = vmul.f32 %v1446_v0, %v1391_v34  ;;  %v1397_v40 = vadd.f32 %v1393_v16, %v1381_v18  ;;  %v1423_v41 = vmul.f32 %v1421_v49, %v1416_v5  ;;  %v1447_v53 = vld [vmem:[#allocation2 + $0x36] sm:$0xff]  ;;  %v2667_v0 = vld [vmem:[%s3194_s23] sm:$0xff]  }
 0x319   : > { %v1412_v15 = vadd.f32 %v1408_v58, %v1396_v6  ;;  %v1414_v17 = vadd.f32 %v1410_v60, %v1398_v7  ;;  %v1411_v43 = vmul.f32 %v1407_v39, %v3302_v9  ;;  %v1437_v45 = vmul.f32 %v1435_v59, %v1430_v12  ;;  %2437 = vmatprep.subr.bf16.mxu0 %v2667_v0 }
 0x31a   : > { %v1383_v36 = vadd.f32 %v1379_v14, %v1367_v28  ;;  %v1413_v44 = vadd.f32 %v1409_v22, %v1397_v40  ;;  %v1425_v51 = vmul.f32 %v1421_v49, %v1417_v25  ;;  %v1453_v34 = vmul.f32 %v1451_v3, %v1445_v42  ;;  %2438 = vmatpush3.bf16.msra.mxu0 %v2667_v0  ;;  %v2668_v22 = vld [vmem:[%s3194_s23 + $0x8] sm:$0xff]   ;;  %v2669_v25 = vld [vmem:[%s3194_s23 + $0x10] sm:$0xff]  }
 0x31b   : > { %v1426_v33 = vadd.f32 %v1422_v2, %v1412_v15  ;;  %v1428_v35 = vadd.f32 %v1424_v4, %v1414_v17  ;;  %v1439_v55 = vmul.f32 %v1435_v59, %v1431_v46  ;;  %v1455_v39 = vmul.f32 %v1451_v3, %v1447_v53  ;;  %2439 = vmatprep.subr.bf16.mxu0 %v2668_v22  ;;  %v2672_v28 = vld [vmem:[%s3194_s23 + $0x28] sm:$0xff]  }
 0x31c   : > { %v1399_v48 = vadd.f32 %v1395_v29, %v1383_v36  ;;  %v1427_v31 = vadd.f32 %v1423_v41, %v1413_v44  ;;  %v1461_v49 = vand.u32 127, %v1352_v19  ;;  %v2673_v29 = vld [vmem:[%s3194_s23 + $0x30] sm:$0xff]  }
 0x31d   : > { %v1440_v30 = vadd.f32 %v1436_v10, %v1426_v33  ;;  %v1442_v32 = vadd.f32 %v1438_v11, %v1428_v35  ;;  %v2674_v33 = vld [vmem:[%s3194_s23 + $0x38] sm:$0xff]  }
 0x31e   : > { %v1415_v54 = vadd.f32 %v1411_v43, %v1399_v48  ;;  %v1441_v56 = vadd.f32 %v1437_v45, %v1427_v31  ;;  %vm1462_vm6 = vcmp.lt.s32.totalorder %v1461_v49, 32  ;;  %2440 = vmatpush3.bf16.msra.mxu0 %v2668_v22 }
 0x31f   : > { %v1456_v52 = vadd.f32 %v1452_v20, %v1440_v30  ;;  %v1458_v50 = vadd.f32 %v1454_v26, %v1442_v32  ;;  %2441 = vmatprep.subr.bf16.mxu0 %v2669_v25  ;;  %v2670_v20 = vld [vmem:[%s3194_s23 + $0x18] sm:$0xff]   ;;  %v2671_v26 = vld [vmem:[%s3194_s23 + $0x20] sm:$0xff]  }
 0x320   : > { %v1429_v58 = vadd.f32 %v1425_v51, %v1415_v54  ;;  %v1457_v60 = vadd.f32 %v1453_v34, %v1441_v56  ;;  %v3320_v51 = vld [vmem:[%s3212_s20 + $0x8] sm:$0xf] }
 0x321   : > { %1463 = vadd.xlane.f32.xlu0 %v1456_v52  ;;  %1467 = vadd.xlane.f32.xlu1 %v1458_v50  ;;  %v1516_v31 = vrot.slane %v3320_v51, %v1354_v21  ;;  %v1524_v56 = vrot.slane %v3320_v51, %v1374_v23  ;;  %v2675_v23 = vld [vmem:[%s3214_s4] sm:$0xff]  }
 0x322   : > { %v1443_v62 = vadd.f32 %v1439_v55, %v1429_v58  ;;  %2442 = vmatpush3.bf16.msra.mxu0 %v2669_v25  ;;  %2457 = vmatprep.subr.bf16.mxu1 %v2675_v23 }
 0x323   : > { %2443 = vmatprep.subr.bf16.mxu0 %v2670_v20  ;;  %2458 = vmatpush3.bf16.msra.mxu1 %v2675_v23  ;;  %v1809_v23 = vrot.slane %v3320_v51, %v1406_v27 }
 0x324   : > { %v1459_v63 = vadd.f32 %v1455_v39, %v1443_v62 }
 0x325   : > { %1465 = vadd.xlane.f32.xlu0 %v1457_v60 }
 0x326   : > { %1469 = vadd.xlane.f32.xlu1 %v1459_v63  ;;  %2444 = vmatpush3.bf16.msra.mxu0 %v2670_v20 }
 0x327   : > { %2445 = vmatprep.subr.bf16.mxu0 %v2671_v26 }
 0x32a   : > { %2446 = vmatpush3.bf16.msra.mxu0 %v2671_v26 }
 0x32b   : > { %2447 = vmatprep.subr.bf16.mxu0 %v2672_v28 }
 0x32e   : > { %2448 = vmatpush3.bf16.msra.mxu0 %v2672_v28 }
 0x32f   : > { %2449 = vmatprep.subr.bf16.mxu0 %v2673_v29 }
 0x332   : > { %2450 = vmatpush3.bf16.msra.mxu0 %v2673_v29 }
 0x333   : > { %2451 = vmatprep.subr.bf16.mxu0 %v2674_v33 }
 0x336   : > { %2452 = vmatpush3.bf16.msra.mxu0 %v2674_v33 }
 0x3ae   : > { %v1464_v1 = vpop.xlane.xlu0 %1463  ;;  %v1468_v57 = vpop.xlane.xlu1 %1467 }
 0x3af   : > { %v1471_v2 = vmul.f32 0.03125, %v1464_v1  ;;  %v1473_v4 = vmul.f32 0.03125, %v1468_v57 }
 0x3b1   : > { %v1475_v59 = vsub.f32 %v1456_v52, %v1471_v2  ;;  %v1477_v5 = vsub.f32 %v1458_v50, %v1473_v4 }
 0x3b2   : > { %v1466_v6 = vpop.xlane.xlu0 %1465 }
 0x3b3   : > { %v1472_v7 = vmul.f32 0.03125, %v1466_v6  ;;  %v1481_v3 = vsel %vm1462_vm6, %v1475_v59, 0.0  ;;  %v1483_v8 = vsel %vm1462_vm6, %v1477_v5, 0.0  ;;  %v1470_v11 = vpop.xlane.xlu1 %1469  ;;  %v2676_v59 = vld [vmem:[%s3214_s4 + $0x8] sm:$0xff]   ;;  %v2677_v5 = vld [vmem:[%s3214_s4 + $0x10] sm:$0xff]   ;;  %v2678_v6 = vld [vmem:[%s3214_s4 + $0x18] sm:$0xff]  }
 0x3b4   : > { %v1485_v16 = vmul.f32 %v1481_v3, %v1481_v3  ;;  %v1474_v12 = vmul.f32 0.03125, %v1470_v11  ;;  %v1487_v19 = vmul.f32 %v1483_v8, %v1483_v8  ;;  %2459 = vmatprep.subr.bf16.mxu1 %v2676_v59 }
 0x3b5   : > { %v1476_v10 = vsub.f32 %v1457_v60, %v1472_v7  ;;  %2460 = vmatpush3.bf16.msra.mxu1 %v2676_v59  ;;  %v2679_v7 = vld [vmem:[%s3214_s4 + $0x20] sm:$0xff]  }
 0x3b6   : > { %1489 = vadd.xlane.f32.xlu0 %v1485_v16  ;;  %v1478_v14 = vsub.f32 %v1459_v63, %v1474_v12  ;;  %2461 = vmatprep.subr.bf16.mxu1 %v2677_v5  ;;  %v2682_v16 = vld [vmem:[%s3214_s4 + $0x38] sm:$0xff]  }
 0x3b7   : > { %v1482_v13 = vsel %vm1462_vm6, %v1476_v10, 0.0  ;;  %v2194_v10 = vld [vmem:[%s505_s27] ss:$0 sm:$0xff] }
 0x3b8   : > { %v1486_v15 = vmul.f32 %v1482_v13, %v1482_v13  ;;  %v1484_v17 = vsel %vm1462_vm6, %v1478_v14, 0.0 }
 0x3b9   : > { %v1488_v18 = vmul.f32 %v1484_v17, %v1484_v17  ;;  %2462 = vmatpush3.bf16.msra.mxu1 %v2677_v5 }
 0x3ba   : > { %1493 = vadd.xlane.f32.xlu0 %v1487_v19  ;;  %1491 = vadd.xlane.f32.xlu1 %v1486_v15 }
 0x3bb   : > { %2463 = vmatprep.subr.bf16.mxu1 %v2678_v6 }
 0x3bd   : > { %2464 = vmatpush3.bf16.msra.mxu1 %v2678_v6 }
 0x3be   : > { %1495 = vadd.xlane.f32.xlu1 %v1488_v18  ;;  %2465 = vmatprep.subr.bf16.mxu1 %v2679_v7 }
 0x3c1   : > { %2466 = vmatpush3.bf16.msra.mxu1 %v2679_v7 }
 0x443   : > { %v1490_v35 = vpop.xlane.xlu0 %1489 }
 0x444   : > { %v1497_v40 = vmul.f32 0.03125, %v1490_v35 }
 0x446   : > { %v1501_v41 = vadd.f32 1e-06, %v1497_v40 }
 0x447   : > { %v1492_v42 = vpop.xlane.xlu1 %1491  ;;  %v1494_v36 = vpop.xlane.xlu0 %1493 }
 0x448   : > { %2683 = vrsqrt.f32 %v1501_v41  ;;  %v1498_v43 = vmul.f32 0.03125, %v1492_v42  ;;  %v1499_v30 = vmul.f32 0.03125, %v1494_v36 }
 0x44a   : > { %v1502_v32 = vadd.f32 1e-06, %v1498_v43  ;;  %v1503_v44 = vadd.f32 1e-06, %v1499_v30 }
 0x44b   : > { %v1496_v45 = vpop.xlane.xlu1 %1495 }
 0x44c   : > { %2685 = vrsqrt.f32 %v1502_v32  ;;  %v1500_v46 = vmul.f32 0.03125, %v1496_v45 }
 0x44d   : > { %2687 = vrsqrt.f32 %v1503_v44 }
 0x44e   : > { %v1504_v48 = vadd.f32 1e-06, %v1500_v46 }
 0x450   : > { %2689 = vrsqrt.f32 %v1504_v48 }
 0x452   : > { %v2684_v52 = vpop.eup %2683 }
 0x453   : > { %v1509_v50 = vmul.f32 %v2684_v52, %v1481_v3  ;;  %v2680_v3 = vld [vmem:[%s3214_s4 + $0x28] sm:$0xff]  }
 0x454   : > { %2467 = vmatprep.subr.bf16.mxu1 %v2680_v3 }
 0x455   : > { %v1517_v55 = vmul.f32 %v1516_v31, %v1509_v50  ;;  %2468 = vmatpush3.bf16.msra.mxu1 %v2680_v3 }
 0x456   : > { %v2686_v34 = vpop.eup %2685 }
 0x457   : > { %v2688_v53 = vpop.eup %2687  ;;  %v1510_v54 = vmul.f32 %v2686_v34, %v1482_v13  ;;  %v1525_v62 = vadd.f32 %v1524_v56, %v1517_v55 }
 0x458   : > { %v1511_v58 = vmul.f32 %v2688_v53, %v1483_v8  ;;  %v2681_v8 = vld [vmem:[%s3214_s4 + $0x30] sm:$0xff]  }
 0x459   : > { %v1518_v39 = vmul.f32 %v1516_v31, %v1510_v54  ;;  %2469 = vmatprep.subr.bf16.mxu1 %v2681_v8 }
 0x45a   : > { %v2690_v60 = vpop.eup %2689  ;;  %v1519_v49 = vmul.f32 %v1516_v31, %v1511_v58  ;;  %2470 = vmatpush3.bf16.msra.mxu1 %v2681_v8 }
 0x45b   : > { %v1526_v63 = vadd.f32 %v1524_v56, %v1518_v39  ;;  %v1512_v0 = vmul.f32 %v2690_v60, %v1484_v17  ;;  %2471 = vmatprep.subr.bf16.mxu1 %v2682_v16 }
 0x45c   : > { %v1527_v57 = vadd.f32 %v1524_v56, %v1519_v49 }
 0x45d   : > { %v1529_v21 = vpack.c.bf16 %v1526_v63, %v1525_v62  ;;  %v1520_v1 = vmul.f32 %v1516_v31, %v1512_v0 }
 0x45e   : > { %2472 = vmatpush3.bf16.msra.mxu1 %v2682_v16 }
 0x45f   : > { %2453 = vmatprep.mubr.bf16.mxu0 %v1529_v21  ;;  %v1528_v2 = vadd.f32 %v1524_v56, %v1520_v1 }
 0x461   : > { %v1530_v4 = vpack.c.bf16 %v1528_v2, %v1527_v57 }
 0x463   : > { %2454 = vmatmul.mubr.bf16.vlgmr.msra.gmra.mrb[0].mxu0 %v1530_v4  ;;  %v1708_v4 = vrot.slane %v3320_v51, %v1390_v24  ;;  %v2699_v51 = vld [vmem:[%s3481_s6] sm:$0xff] (!%p2211_p0)  }
 0x464   : > { %2477 = vmatprep.subr.bf16.mxu0 (!%p2211_p0), %v2699_v51 }
 0x465   : > { %2478 = vmatpush3.bf16.msra.mxu0 (!%p2211_p0), %v2699_v51 }
 0x536   : > { %v2455_v11 = vpop.f32.mrb[0].mxu0 }
 0x537   : > { %v1645_v12 = vadd.f32 %v2455_v11, %v2194_v10  ;;  %v1636_v19 = vpop.f32.mrb[1].mxu0 }
 0x538   : > { %v1637_v13 = vadd.f32 %v2194_v10, %v1636_v19  ;;  %v2456_v14 = vpop.f32.mrb[2].mxu0 }
 0x539   : > { %v1657_v15 = vmul.f32 0.044715, %v1645_v12  ;;  %v1648_v17 = vadd.f32 %v2456_v14, %v2194_v10  ;;  %v1639_v18 = vpop.f32.mrb[3].mxu0  ;;  %v1653_v56 = vmul.f32 0.5, %v1645_v12 }
 0x53a   : > { %v1655_v22 = vmul.f32 0.044715, %v1637_v13  ;;  %v1640_v25 = vadd.f32 %v2194_v10, %v1639_v18  ;;  %v1651_v60 = vmul.f32 0.5, %v1637_v13  ;;  %v2705_v18 = vld [vmem:[%s3481_s6 + $0x30] sm:$0xff] (!%p2211_p0)  }
 0x53b   : > { %v1661_v20 = vmul.f32 %v1657_v15, %v1645_v12  ;;  %v1658_v26 = vmul.f32 0.044715, %v1648_v17  ;;  %v1654_v58 = vmul.f32 0.5, %v1648_v17  ;;  %v2703_v15 = vld [vmem:[%s3481_s6 + $0x20] sm:$0xff] (!%p2211_p0)  }
 0x53c   : > { %v1656_v28 = vmul.f32 0.044715, %v1640_v25  ;;  %v1659_v29 = vmul.f32 %v1655_v22, %v1637_v13  ;;  %v1652_v62 = vmul.f32 0.5, %v1640_v25  ;;  %v2706_v22 = vld [vmem:[%s3481_s6 + $0x38] sm:$0xff] (!%p2211_p0)  }
 0x53d   : > { %v1665_v33 = vmul.f32 %v1661_v20, %v1645_v12  ;;  %v1662_v35 = vmul.f32 %v1658_v26, %v1648_v17 }
 0x53e   : > { %v1660_v40 = vmul.f32 %v1656_v28, %v1640_v25  ;;  %v1663_v41 = vmul.f32 %v1659_v29, %v1637_v13 }
 0x53f   : > { %v1666_v42 = vmul.f32 %v1662_v35, %v1648_v17  ;;  %v1669_v36 = vadd.f32 %v1665_v33, %v1645_v12 }
 0x540   : > { %v1664_v43 = vmul.f32 %v1660_v40, %v1640_v25  ;;  %v1667_v30 = vadd.f32 %v1663_v41, %v1637_v13 }
 0x541   : > { %v1670_v32 = vadd.f32 %v1666_v42, %v1648_v17  ;;  %v1673_v44 = vmul.f32 0.7978846, %v1669_v36  ;;  %v2704_v17 = vld [vmem:[%s3481_s6 + $0x28] sm:$0xff] (!%p2211_p0)  }
 0x542   : > { %v1668_v45 = vadd.f32 %v1664_v43, %v1640_v25  ;;  %v1671_v46 = vmul.f32 0.7978846, %v1667_v30 }
 0x543   : > { %v1674_v48 = vmul.f32 0.7978846, %v1670_v32  ;;  %2691 = vtanh.f32 %v1673_v44 }
 0x544   : > { %v1672_v52 = vmul.f32 0.7978846, %v1668_v45  ;;  %2693 = vtanh.f32 %v1671_v46 }
 0x545   : > { %2695 = vtanh.f32 %v1674_v48 }
 0x546   : > { %2697 = vtanh.f32 %v1672_v52 }
 0x54d   : > { %v2692_v50 = vpop.eup %2691 }
 0x54e   : > { %v2694_v31 = vpop.eup %2693  ;;  %v1681_v34 = vadd.f32 1.0, %v2692_v50 }
 0x54f   : > { %v2696_v53 = vpop.eup %2695  ;;  %v1679_v54 = vadd.f32 1.0, %v2694_v31 }
 0x550   : > { %v2698_v55 = vpop.eup %2697  ;;  %v1682_v39 = vadd.f32 1.0, %v2696_v53  ;;  %v1685_v0 = vmul.f32 %v1681_v34, %v1653_v56 }
 0x551   : > { %v1680_v63 = vadd.f32 1.0, %v2698_v55  ;;  %v1683_v21 = vmul.f32 %v1679_v54, %v1651_v60 }
 0x552   : > { %v1686_v49 = vmul.f32 %v1682_v39, %v1654_v58 }
 0x553   : > { %v1684_v1 = vmul.f32 %v1680_v63, %v1652_v62 }
 0x554   : > { %v1688_v57 = vpack.c.bf16 %v1686_v49, %v1685_v0 }
 0x555   : > { %v1687_v2 = vpack.c.bf16 %v1684_v1, %v1683_v21 }
 0x557   : > { %2473 = vmatprep.mubr.bf16.mxu1 %v1687_v2 }
 0x558   : > { %2474 = vmatmul.mubr.bf16.vlgmr.msra.gmra.mrb[0].mxu1 %v1688_v57 }
 0x62b   : > { %v2475_v59 = vpop.f32.mrb[0].mxu1 }
 0x62c   : > { %v1800_v5 = vadd.f32 %v2475_v59, %v1708_v4  ;;  %v1791_v6 = vpop.f32.mrb[1].mxu1 }
 0x62d   : > { %v1792_v7 = vadd.f32 %v1791_v6, %v1708_v4  ;;  %v2476_v3 = vpop.f32.mrb[2].mxu1 }
 0x62e   : > { %v1812_v8 = vmul.f32 %v1809_v23, %v1800_v5  ;;  %v1803_v16 = vadd.f32 %v2476_v3, %v1708_v4  ;;  %v1794_v10 = vpop.f32.mrb[3].mxu1 }
 0x62f   : > { %v1810_v11 = vmul.f32 %v1809_v23, %v1792_v7  ;;  %v1795_v12 = vadd.f32 %v1794_v10, %v1708_v4  ;;  %1825 = sbr.rel (%p2211_p0) target bundleno = 1830 (0x726), region = 84 }
 0x630   : > { %v1816_v19 = vadd.f32 %v1812_v8, %v3296_v47  ;;  %v1813_v13 = vmul.f32 %v1809_v23, %v1803_v16 }
 0x631   : > { %v1814_v14 = vadd.f32 %v1810_v11, %v3290_v37  ;;  %v1811_v24 = vmul.f32 %v1809_v23, %v1795_v12  ;;  %v2700_v37 = vld [vmem:[%s3481_s6 + $0x8] sm:$0xff] (!%p2211_p0)  }
 0x632   : > { %1820 = vst [vmem:[#allocation2 + $0x28] sm:$0xff] %v1816_v19  ;;  %v1817_v38 = vadd.f32 %v1813_v13, %v3302_v9  ;;  %2479 = vmatprep.subr.bf16.mxu0 (!%p2211_p0), %v2700_v37  ;;  %v2702_v9 = vld [vmem:[%s3481_s6 + $0x18] sm:$0xff] (!%p2211_p0)  }
 0x633   : > { %1818 = vst [vmem:[#allocation2 + $0x8] sm:$0xff] %v1814_v14  ;;  %v1815_v27 = vadd.f32 %v1811_v24, %v3300_v61  ;;  %v2701_v61 = vld [vmem:[%s3481_s6 + $0x10] sm:$0xff] (!%p2211_p0)   ;;  %2480 = vmatpush3.bf16.msra.mxu0 (!%p2211_p0), %v2700_v37 }
 0x634   : > { %1821 = vst [vmem:[#allocation2 + $0x30] sm:$0xff] %v1817_v38  ;;  %2481 = vmatprep.subr.bf16.mxu0 (!%p2211_p0), %v2701_v61  ;;  %v1827_v25 = vpack.c.bf16 (!%p2211_p0), %v1817_v38, %v1816_v19 }
 0x635   : > { %1819 = vst [vmem:[#allocation2 + $0x10] sm:$0xff] %v1815_v27  ;;  %v1826_v47 = vpack.c.bf16 (!%p2211_p0), %v1815_v27, %v1814_v14 }
 0x637   : > { %2493 = vmatprep.mubr.bf16.mxu0 %v1826_v47  ;;  %2482 = vmatpush3.bf16.msra.mxu0 %v2701_v61 }
 0x638   : > { %2483 = vmatprep.subr.bf16.mxu0 %v2702_v9 }
 0x63b   : > { %2484 = vmatpush3.bf16.msra.mxu0 %v2702_v9 }
 0x63c   : > { %2485 = vmatprep.subr.bf16.mxu0 %v2703_v15 }
 0x63f   : > { %2486 = vmatpush3.bf16.msra.mxu0 %v2703_v15 }
 0x640   : > { %2487 = vmatprep.subr.bf16.mxu0 %v2704_v17 }
 0x643   : > { %2488 = vmatpush3.bf16.msra.mxu0 %v2704_v17 }
 0x644   : > { %2489 = vmatprep.subr.bf16.mxu0 %v2705_v18 }
 0x647   : > { %2490 = vmatpush3.bf16.msra.mxu0 %v2705_v18 }
 0x648   : > { %2491 = vmatprep.subr.bf16.mxu0 %v2706_v22 }
 0x64b   : > { %2492 = vmatpush3.bf16.msra.mxu0 %v2706_v22 }
 0x64e   : > { %2494 = vmatmul.mubr.bf16.vlgmr.msra.gmra.mrb[0].mxu0 %v1827_v25 }
 0x721   : > { %v2495_v20 = vpop.f32.mrb[0].mxu0 }
 0x722   : > { %1943 = vst [vmem:[#allocation10 + $0x10] sm:$0xff] %v2495_v20  ;;  %v1926_v26 = vpop.f32.mrb[1].mxu0 }
 0x723   : > { %1941 = vst [vmem:[#allocation10] sm:$0xff] %v1926_v26  ;;  %v2496_v28 = vpop.f32.mrb[2].mxu0 }
 0x724   : > { %1944 = vst [vmem:[#allocation10 + $0x18] sm:$0xff] %v2496_v28  ;;  %v1929_v29 = vpop.f32.mrb[3].mxu0 }
 0x725   : > { %1942 = vst [vmem:[#allocation10 + $0x8] sm:$0xff] %v1929_v29 }
 0x726 PF: > { %p2548_p12 = scmp.eq.s32.totalorder %s3008_s19, 1  ;;  %s2921_s9 = smov [#allocation10]  }
 0x727   : > { %s1955_s26 = sshll.u32 %s2921_s9, 4  ;;  %s1956_s26 = int_to_ptr.vmem [resolvable:$true] %s1955_s26 }
 0x728   : > { %s2823_s12 = scalar_lea.vmem %s1956_s26, 512  ;;  %p2830_p6 = scmp.lt.s32.totalorder %s1956_s26, %s1956_s26 }
 0x729   : > { %p2824_p2 = scmp.ne.s32.totalorder %s1956_s26, %s2823_s12  ;;  %p2831_p10 = scmp.lt.s32.totalorder %s2823_s12, %s2823_s12 }
 0x72b   : > { %p2825_p9 = pnand %p2824_p2, %p2548_p12  ;;  %p2832_p11 = por %p2831_p10, %p2830_p6 }
 0x72d   : > { %p2826_p3 = pneg %p2825_p9 }
 0x72f   : > { %p2833_p8 = pnand %p2832_p11, %p2826_p3 }
 0x731   : > { %2836 = shalt.err (!%p2833_p8)
}
 0x732   : > { %s3482_s23 = sld [smem:[#allocation23_spill]] }
 0x738   : > { %s2837_s1 = scalar_lea.hbm %s3482_s23, 512 }
 0x739   : > { %p2838_p1 = scmp.ne.s32.totalorder %s3482_s23, %s2837_s1  ;;  %p2843_p5 = scmp.lt.u32.totalorder %s2837_s1, %s3482_s23 }
 0x73b   : > { %p2839_p4 = pnand %p2838_p1, %p2548_p12 }
 0x73d   : > { %p2840_p13 = pneg %p2839_p4 }
 0x73f   : > { %p2845_p7 = pnand %p2843_p5, %p2840_p13 }
 0x741   : > { %2848 = shalt.err (!%p2845_p7)
}
 0x742   : > { %s2922_s16 = smov 128   ;;  %s2923_s25 = smov 8  }
 0x743   : > { %2526 = dma.vmem_to_hbm [thread:$0]  (%p2548_p12), %s1956_s26, 512, %s3482_s23, [#allocation5], %s2922_s16, %s2922_s16, %s2923_s25  }
 0x744   : > { %2886 = dma.done.wait (%p2548_p12), [#allocation5], 512  }
 0x745   : > { %2888 = vsyncadd (%p2548_p12), [#allocation5], 4294966784 }
 0x746 PF: > { %s3483_s21 = sld [smem:[#allocation16_spill]]  ;;  %s3484_s28 = sld [smem:[#allocation15_spill]] }
 0x747   : > { %s3485_s15 = sld [smem:[#allocation18_spill]]  ;;  %s3486_s30 = sld [smem:[#allocation17_spill]] }
 0x748   : > { %s3487_s13 = smov %s2895_s14  ;;  %s3489_s16 = smov %s2907_s17 }
 0x74c   : > { %s23_s18 = sadd.s32 1, %s3483_s21   ;;  %s3488_s14 = smov %s3484_s28 }
 0x74d   : > { %p20_p0 = scmp.ge.s32.totalorder %s23_s18, 4   ;;  %s3490_s17 = smov %s3486_s30 }
 0x74f   :  { %22 = sbr.rel (!%p20_p0) target bundleno = 11 (0xb), region = 137 }
 0x756   :  { %1971 = vsyncpa [#allocation4], 1 }
 0x757   :  { %1973 = vsyncpa [#allocation4 + $0x1], 1 }
 0x758   :  { %1974 = vsyncpa [#allocation7], 1 }
 0x759   :  { %1975 = vsyncpa [#allocation5], 1 }
 0x75a   :  { %1977 = vsyncpa [#allocation5 + $0x1], 1 }

</bundles_post_ra>
